<compile_context>
chip_gen: v6e
topology: v6e:2x2x1
jax: 0.10.0
libtpu: 0.0.40
codegen_flags: <defaults>
</compile_context>

<pallas_src>
import jax
import jax.numpy as jnp
from jax.experimental import pallas as pl
from jax.experimental.pallas import tpu as pltpu


def _round_up(x, m):
    return (x + m - 1) // m * m


# ----------------------------------------------------------------------------
# Pallas kernels
# ----------------------------------------------------------------------------
def _conv_relu_pool_kernel(q0_ref, q1_ref, q2_ref, q3_ref, w_ref, b_ref, o_ref):
    """maxpool2x2(relu(conv2d)) for one block of pooled output rows.

    q*_ref : (TM, K) bf16 -- im2col patches for the 4 members of each 2x2
                             pool window (row r of every ref is the same
                             pooled output position).
    w_ref  : (K, OC) bf16 -- conv weight, unpadded.
    b_ref  : (1, OC) f32
    o_ref  : (TM, OC) bf16

    Uses max_i relu(x_i + b) == relu(max_i(x_i) + b); f32 accumulation.
    """
    w = w_ref[...]
    m = jnp.dot(q0_ref[...], w, preferred_element_type=jnp.float32)
    m = jnp.maximum(m, jnp.dot(q1_ref[...], w, preferred_element_type=jnp.float32))
    m = jnp.maximum(m, jnp.dot(q2_ref[...], w, preferred_element_type=jnp.float32))
    m = jnp.maximum(m, jnp.dot(q3_ref[...], w, preferred_element_type=jnp.float32))
    o_ref[...] = jnp.maximum(m + b_ref[...], 0.0).astype(o_ref.dtype)


def _mlp_kernel(x_ref, w1_ref, b1_ref, w2_ref, b2_ref, w3_ref, b3_ref, o_ref):
    """Fused fc1(+ReLU) -> fc2(+ReLU) -> fc3.  bf16 MXU operands, f32 accum."""
    h = jnp.dot(x_ref[...], w1_ref[...], preferred_element_type=jnp.float32)
    h = jnp.maximum(h + b1_ref[...], 0.0)
    h = jnp.dot(h.astype(w2_ref.dtype), w2_ref[...],
                preferred_element_type=jnp.float32)
    h = jnp.maximum(h + b2_ref[...], 0.0)
    h = jnp.dot(h.astype(w3_ref.dtype), w3_ref[...],
                preferred_element_type=jnp.float32)
    o_ref[...] = (h + b3_ref[...]).astype(o_ref.dtype)


# ----------------------------------------------------------------------------
# Wrappers
# ----------------------------------------------------------------------------
def conv_relu_pool(x_nhwc, w_oihw, b):
    """maxpool2x2(relu(conv2d(x))), stride-1 VALID conv, PyTorch weight layout.

    x_nhwc: (B, H, W, C).  w_oihw: (OC, C, k, k).  Returns NHWC
    (B, Ho//2, Wo//2, OC) in bf16.
    """
    B, H, W, C = x_nhwc.shape
    OC, _, k, _ = w_oihw.shape
    Ho, Wo = H - k + 1, W - k + 1
    assert Ho % 2 == 0 and Wo % 2 == 0
    Ho2, Wo2 = Ho // 2, Wo // 2
    K = C * k * k
    R = B * Ho2 * Wo2            # total pooled output positions

    xb = x_nhwc.astype(jnp.bfloat16)

    # One strided patch-extraction per 2x2 pool-window member.  Each pass
    # writes its patches directly in the final (pooled-row, K) layout, so
    # there is no materialized quadrant transpose / pad / cast over the big
    # patch tensor.  conv_general_dilated_patches orders the feature dim as
    # (c, kh, kw), matching torch_weight.reshape(OC, C*k*k).
    quads = []
    for dh in (0, 1):
        for dw in (0, 1):
            p = jax.lax.conv_general_dilated_patches(
                xb[:, dh:, dw:, :], (k, k), (2, 2), "VALID",
                dimension_numbers=("NHWC", "HWIO", "NHWC"))  # (B, Ho2, Wo2, K)
            quads.append(p.reshape(R, K))                    # free reshape

    wmat = jnp.transpose(w_oihw.reshape(OC, K)).astype(jnp.bfloat16)  # (K, OC)
    bias = b.astype(jnp.float32).reshape(1, OC)

    # Row blocking.  K and OC stay unpadded (full-dim last axes are legal).
    # Choose TM a multiple of 8, >=2 grid steps when there is enough work
    # (keeps both v7x TensorCores busy and pipelines DMA vs compute), capped
    # so the 4 double-buffered patch blocks stay far below v5e's 16 MiB
    # scoped VMEM (4 * 1024 * 150 * 2 B * 2 buffers ~= 2.4 MiB worst case).
    if R <= 64:
        tm = R                                     # single full-dim block
    else:
        tm = min(1024, _round_up(pl.cdiv(R, 2), 8))
    grid = (pl.cdiv(R, tm),)

    out = pl.pallas_call(
        _conv_relu_pool_kernel,
        out_shape=jax.ShapeDtypeStruct((R, OC), jnp.bfloat16),
        grid=grid,
        in_specs=[pl.BlockSpec((tm, K), lambda i: (i, 0))] * 4 + [
            pl.BlockSpec((K, OC), lambda i: (0, 0)),
            pl.BlockSpec((1, OC), lambda i: (0, 0)),
        ],
        out_specs=pl.BlockSpec((tm, OC), lambda i: (i, 0)),
        compiler_params=pltpu.CompilerParams(
            dimension_semantics=("parallel",)),
    )(*quads, wmat, bias)

    return out.reshape(B, Ho2, Wo2, OC)


def fused_mlp(x, w1, b1, w2, b2, w3, b3):
    """relu(x@w1.T+b1) -> relu(@w2.T+b2) -> @w3.T+b3, in one Pallas kernel.

    All feature dims unpadded (full-dim blocks); batch row-blocked.
    """
    B, K = x.shape
    n1, n2, n3 = w1.shape[0], w2.shape[0], w3.shape[0]

    xb = x.astype(jnp.bfloat16)
    w1p = jnp.transpose(w1).astype(jnp.bfloat16)   # (K,  n1)
    w2p = jnp.transpose(w2).astype(jnp.bfloat16)   # (n1, n2)
    w3p = jnp.transpose(w3).astype(jnp.bfloat16)   # (n2, n3)
    b1p = b1.astype(jnp.float32).reshape(1, n1)
    b2p = b2.astype(jnp.float32).reshape(1, n2)
    b3p = b3.astype(jnp.float32).reshape(1, n3)

    # Row blocking: never a whole-batch block for awkward B; >=2 grid steps
    # once B > 8 so the 'parallel' axis can be split across v7x's two TCs.
    if B <= 8:
        tm = B                                     # single full-dim block
    else:
        tm = min(256, _round_up(pl.cdiv(B, 2), 8))
    grid = (pl.cdiv(B, tm),)

    out = pl.pallas_call(
        _mlp_kernel,
        out_shape=jax.ShapeDtypeStruct((B, n3), jnp.float32),
        grid=grid,
        in_specs=[
            pl.BlockSpec((tm, K), lambda i: (i, 0)),
            pl.BlockSpec((K, n1), lambda i: (0, 0)),
            pl.BlockSpec((1, n1), lambda i: (0, 0)),
            pl.BlockSpec((n1, n2), lambda i: (0, 0)),
            pl.BlockSpec((1, n2), lambda i: (0, 0)),
            pl.BlockSpec((n2, n3), lambda i: (0, 0)),
            pl.BlockSpec((1, n3), lambda i: (0, 0)),
        ],
        out_specs=pl.BlockSpec((tm, n3), lambda i: (i, 0)),
        compiler_params=pltpu.CompilerParams(
            dimension_semantics=("parallel",)),
    )(xb, w1p, b1p, w2p, b2p, w3p, b3p)
    return out


# ----------------------------------------------------------------------------
# Net forward (matches the PyTorch module)
# ----------------------------------------------------------------------------
def net_forward(x, params):
    """x: (B, 3, 32, 32) f32 NCHW, exactly like the PyTorch module."""
    x = jnp.transpose(x, (0, 2, 3, 1))                      # single NCHW->NHWC
    x = conv_relu_pool(x, params["conv1_w"], params["conv1_b"])   # (B,14,14,6)
    x = conv_relu_pool(x, params["conv2_w"], params["conv2_b"])   # (B,5,5,16)
    B, Hf, Wf, Cf = x.shape
    feat = x.reshape(B, Hf * Wf * Cf)                       # NHWC flatten (h,w,c)
    # Fold torch's NCHW .view(-1, 16*5*5) ordering into fc1's columns.
    fc1_w = params["fc1_w"].reshape(-1, Cf, Hf, Wf).transpose(0, 2, 3, 1)
    fc1_w = fc1_w.reshape(-1, Hf * Wf * Cf)
    return fused_mlp(feat, fc1_w, params["fc1_b"],
                     params["fc2_w"], params["fc2_b"],
                     params["fc3_w"], params["fc3_b"])


def net_reference(x, params):
    """Pure-JAX (non-Pallas) forward with PyTorch semantics, for sanity check."""
    def conv(x, w, b):
        y = jax.lax.conv_general_dilated(
            x, w, (1, 1), "VALID",
            dimension_numbers=("NCHW", "OIHW", "NCHW"))
        return jax.nn.relu(y + b[None, :, None, None])

    def pool(x):
        return jax.lax.reduce_window(x, -jnp.inf, jax.lax.max,
                                     (1, 1, 2, 2), (1, 1, 2, 2), "VALID")

    x = pool(conv(x, params["conv1_w"], params["conv1_b"]))
    x = pool(conv(x, params["conv2_w"], params["conv2_b"]))
    x = x.reshape(x.shape[0], -1)
    x = jax.nn.relu(x @ params["fc1_w"].T + params["fc1_b"])
    x = jax.nn.relu(x @ params["fc2_w"].T + params["fc2_b"])
    return x @ params["fc3_w"].T + params["fc3_b"]


def init_params(key, num_classes=10):
    """Deterministic init mimicking PyTorch defaults: U(-1/sqrt(fan_in), +)."""
    def uniform(k, shape, fan_in):
        bound = 1.0 / jnp.sqrt(jnp.float32(fan_in))
        return jax.random.uniform(k, shape, jnp.float32, -bound, bound)

    ks = jax.random.split(key, 10)
    p = {}
    p["conv1_w"] = uniform(ks[0], (6, 3, 5, 5), 3 * 5 * 5)
    p["conv1_b"] = uniform(ks[1], (6,), 3 * 5 * 5)
    p["conv2_w"] = uniform(ks[2], (16, 6, 5, 5), 6 * 5 * 5)
    p["conv2_b"] = uniform(ks[3], (16,), 6 * 5 * 5)
    p["fc1_w"] = uniform(ks[4], (120, 400), 400)
    p["fc1_b"] = uniform(ks[5], (120,), 400)
    p["fc2_w"] = uniform(ks[6], (84, 120), 120)
    p["fc2_b"] = uniform(ks[7], (84,), 120)
    p["fc3_w"] = uniform(ks[8], (num_classes, 84), 84)
    p["fc3_b"] = uniform(ks[9], (num_classes,), 84)
    return p


if __name__ == "__main__":
    key = jax.random.PRNGKey(0)
    k_params, k_x = jax.random.split(key)

    num_classes = 10
    params = init_params(k_params, num_classes)

    # The module's 16*5*5 flatten implies a (B, 3, 32, 32) input (LeNet/CIFAR).
    B = 2
    x = jax.random.normal(k_x, (B, 3, 32, 32), jnp.float32)

    out = jax.jit(net_forward)(x, params)
    out = jax.block_until_ready(out)

    assert out.shape == (B, num_classes), out.shape
    assert out.dtype == jnp.float32

    # Loose sanity check vs a pure-JAX f32 reference (Pallas path uses bf16
    # MXU operands and bf16 activation storage, so small drift is expected).
    ref = jax.block_until_ready(jax.jit(net_reference)(x, params))
    assert jnp.allclose(out, ref, rtol=5e-2, atol=5e-2), float(
        jnp.max(jnp.abs(out - ref)))

    print("KERNEL_OK")
</pallas_src>

<mosaic_0001>
module attributes {stable_mosaic.version = 11 : i64} {
  func.func @_conv_relu_pool_kernel(%arg0: i32, %arg1: memref<200x75xbf16, #tpu.memory_space<vmem>>, %arg2: memref<200x75xbf16, #tpu.memory_space<vmem>>, %arg3: memref<200x75xbf16, #tpu.memory_space<vmem>>, %arg4: memref<200x75xbf16, #tpu.memory_space<vmem>>, %arg5: memref<75x6xbf16, #tpu.memory_space<vmem>>, %arg6: memref<1x6xf32, #tpu.memory_space<vmem>>, %arg7: memref<200x6xbf16, #tpu.memory_space<vmem>>) attributes {dimension_semantics = [#tpu.dimension_semantics<parallel>], iteration_bounds = array<i64: 2>, scalar_prefetch = 0 : i64, scratch_operands = 0 : i64, tpu.core_type = #tpu.core_type<tc>, window_params = [{transform_indices = @transform_0, window_bounds = array<i64: 200, 75>}, {transform_indices = @transform_1, window_bounds = array<i64: 200, 75>}, {transform_indices = @transform_2, window_bounds = array<i64: 200, 75>}, {transform_indices = @transform_3, window_bounds = array<i64: 200, 75>}, {pipeline_mode = #tpu.pipeline_mode<synchronous>, transform_indices = @transform_4, window_bounds = array<i64: 75, 6>}, {pipeline_mode = #tpu.pipeline_mode<synchronous>, transform_indices = @transform_5, window_bounds = array<i64: 1, 6>}, {transform_indices = @transform_6, window_bounds = array<i64: 200, 6>}]} {
    %c0 = arith.constant 0 : index
    %c0_0 = arith.constant 0 : index
    %0 = vector.load %arg5[%c0, %c0_0] : memref<75x6xbf16, #tpu.memory_space<vmem>>, vector<75x6xbf16>
    %c0_1 = arith.constant 0 : index
    %c0_2 = arith.constant 0 : index
    %1 = vector.load %arg1[%c0_1, %c0_2] : memref<200x75xbf16, #tpu.memory_space<vmem>>, vector<200x75xbf16>
    %cst = arith.constant dense<0.000000e+00> : vector<200x6xf32>
    %2 = tpu.matmul %1, %0, %cst {dimension_numbers = #tpu.dot_dimension_numbers<[1], [0], [0], [1], [0, 0, 1, 1], [], []>} : vector<200x75xbf16>, vector<75x6xbf16>, vector<200x6xf32> -> vector<200x6xf32>
    %c0_3 = arith.constant 0 : index
    %c0_4 = arith.constant 0 : index
    %3 = vector.load %arg2[%c0_3, %c0_4] : memref<200x75xbf16, #tpu.memory_space<vmem>>, vector<200x75xbf16>
    %cst_5 = arith.constant dense<0.000000e+00> : vector<200x6xf32>
    %4 = tpu.matmul %3, %0, %cst_5 {dimension_numbers = #tpu.dot_dimension_numbers<[1], [0], [0], [1], [0, 0, 1, 1], [], []>} : vector<200x75xbf16>, vector<75x6xbf16>, vector<200x6xf32> -> vector<200x6xf32>
    %5 = arith.maximumf %2, %4 : vector<200x6xf32>
    %c0_6 = arith.constant 0 : index
    %c0_7 = arith.constant 0 : index
    %6 = vector.load %arg3[%c0_6, %c0_7] : memref<200x75xbf16, #tpu.memory_space<vmem>>, vector<200x75xbf16>
    %cst_8 = arith.constant dense<0.000000e+00> : vector<200x6xf32>
    %7 = tpu.matmul %6, %0, %cst_8 {dimension_numbers = #tpu.dot_dimension_numbers<[1], [0], [0], [1], [0, 0, 1, 1], [], []>} : vector<200x75xbf16>, vector<75x6xbf16>, vector<200x6xf32> -> vector<200x6xf32>
    %8 = arith.maximumf %5, %7 : vector<200x6xf32>
    %c0_9 = arith.constant 0 : index
    %c0_10 = arith.constant 0 : index
    %9 = vector.load %arg4[%c0_9, %c0_10] : memref<200x75xbf16, #tpu.memory_space<vmem>>, vector<200x75xbf16>
    %cst_11 = arith.constant dense<0.000000e+00> : vector<200x6xf32>
    %10 = tpu.matmul %9, %0, %cst_11 {dimension_numbers = #tpu.dot_dimension_numbers<[1], [0], [0], [1], [0, 0, 1, 1], [], []>} : vector<200x75xbf16>, vector<75x6xbf16>, vector<200x6xf32> -> vector<200x6xf32>
    %11 = arith.maximumf %8, %10 : vector<200x6xf32>
    %c0_12 = arith.constant 0 : index
    %c0_13 = arith.constant 0 : index
    %12 = vector.load %arg6[%c0_12, %c0_13] : memref<1x6xf32, #tpu.memory_space<vmem>>, vector<1x6xf32>
    %13 = vector.broadcast %12 : vector<1x6xf32> to vector<200x6xf32>
    %14 = arith.addf %11, %13 : vector<200x6xf32>
    %cst_14 = arith.constant 0.000000e+00 : f32
    %15 = vector.broadcast %cst_14 : f32 to vector<200x6xf32>
    %16 = arith.maximumf %14, %15 : vector<200x6xf32>
    %17 = arith.truncf %16 : vector<200x6xf32> to vector<200x6xbf16>
    %c0_15 = arith.constant 0 : index
    %c0_16 = arith.constant 0 : index
    %18 = vector.load %arg7[%c0_15, %c0_16] : memref<200x6xbf16, #tpu.memory_space<vmem>>, vector<200x6xbf16>
    tpu.vector_store %arg7[%c0_15, %c0_16], %17 {strides = array<i32>} : memref<200x6xbf16, #tpu.memory_space<vmem>>, vector<200x6xbf16>,
    return
  }
  func.func @transform_0(%arg0: i32) -> (i32, i32) {
    %c0_i32 = arith.constant 0 : i32
    %c0_i32_0 = arith.constant 0 : i32
    return %arg0, %c0_i32 : i32, i32
  }
  func.func @transform_1(%arg0: i32) -> (i32, i32) {
    %c0_i32 = arith.constant 0 : i32
    %c0_i32_0 = arith.constant 0 : i32
    return %arg0, %c0_i32 : i32, i32
  }
  func.func @transform_2(%arg0: i32) -> (i32, i32) {
    %c0_i32 = arith.constant 0 : i32
    %c0_i32_0 = arith.constant 0 : i32
    return %arg0, %c0_i32 : i32, i32
  }
  func.func @transform_3(%arg0: i32) -> (i32, i32) {
    %c0_i32 = arith.constant 0 : i32
    %c0_i32_0 = arith.constant 0 : i32
    return %arg0, %c0_i32 : i32, i32
  }
  func.func @transform_4(%arg0: i32) -> (i32, i32) {
    %c0_i32 = arith.constant 0 : i32
    %c0_i32_0 = arith.constant 0 : i32
    %c0_i32_1 = arith.constant 0 : i32
    return %c0_i32, %c0_i32_0 : i32, i32
  }
  func.func @transform_5(%arg0: i32) -> (i32, i32) {
    %c0_i32 = arith.constant 0 : i32
    %c0_i32_0 = arith.constant 0 : i32
    %c0_i32_1 = arith.constant 0 : i32
    return %c0_i32, %c0_i32_0 : i32, i32
  }
  func.func @transform_6(%arg0: i32) -> (i32, i32) {
    %c0_i32 = arith.constant 0 : i32
    %c0_i32_0 = arith.constant 0 : i32
    return %arg0, %c0_i32 : i32, i32
  }
}

module attributes {stable_mosaic.version = 11 : i64} {
  func.func @_conv_relu_pool_kernel(%arg0: i32, %arg1: memref<50x150xbf16, #tpu.memory_space<vmem>>, %arg2: memref<50x150xbf16, #tpu.memory_space<vmem>>, %arg3: memref<50x150xbf16, #tpu.memory_space<vmem>>, %arg4: memref<50x150xbf16, #tpu.memory_space<vmem>>, %arg5: memref<150x16xbf16, #tpu.memory_space<vmem>>, %arg6: memref<1x16xf32, #tpu.memory_space<vmem>>, %arg7: memref<50x16xbf16, #tpu.memory_space<vmem>>) attributes {dimension_semantics = [#tpu.dimension_semantics<parallel>], iteration_bounds = array<i64: 1>, scalar_prefetch = 0 : i64, scratch_operands = 0 : i64, tpu.core_type = #tpu.core_type<tc>, window_params = [{transform_indices = @transform_0, window_bounds = array<i64: 50, 150>}, {transform_indices = @transform_1, window_bounds = array<i64: 50, 150>}, {transform_indices = @transform_2, window_bounds = array<i64: 50, 150>}, {transform_indices = @transform_3, window_bounds = array<i64: 50, 150>}, {pipeline_mode = #tpu.pipeline_mode<synchronous>, transform_indices = @transform_4, window_bounds = array<i64: 150, 16>}, {pipeline_mode = #tpu.pipeline_mode<synchronous>, transform_indices = @transform_5, window_bounds = array<i64: 1, 16>}, {transform_indices = @transform_6, window_bounds = array<i64: 50, 16>}]} {
    %c0 = arith.constant 0 : index
    %c0_0 = arith.constant 0 : index
    %0 = vector.load %arg5[%c0, %c0_0] : memref<150x16xbf16, #tpu.memory_space<vmem>>, vector<150x16xbf16>
    %c0_1 = arith.constant 0 : index
    %c0_2 = arith.constant 0 : index
    %1 = vector.load %arg1[%c0_1, %c0_2] : memref<50x150xbf16, #tpu.memory_space<vmem>>, vector<50x150xbf16>
    %cst = arith.constant dense<0.000000e+00> : vector<50x16xf32>
    %2 = tpu.matmul %1, %0, %cst {dimension_numbers = #tpu.dot_dimension_numbers<[1], [0], [0], [1], [0, 0, 1, 1], [], []>} : vector<50x150xbf16>, vector<150x16xbf16>, vector<50x16xf32> -> vector<50x16xf32>
    %c0_3 = arith.constant 0 : index
    %c0_4 = arith.constant 0 : index
    %3 = vector.load %arg2[%c0_3, %c0_4] : memref<50x150xbf16, #tpu.memory_space<vmem>>, vector<50x150xbf16>
    %cst_5 = arith.constant dense<0.000000e+00> : vector<50x16xf32>
    %4 = tpu.matmul %3, %0, %cst_5 {dimension_numbers = #tpu.dot_dimension_numbers<[1], [0], [0], [1], [0, 0, 1, 1], [], []>} : vector<50x150xbf16>, vector<150x16xbf16>, vector<50x16xf32> -> vector<50x16xf32>
    %5 = arith.maximumf %2, %4 : vector<50x16xf32>
    %c0_6 = arith.constant 0 : index
    %c0_7 = arith.constant 0 : index
    %6 = vector.load %arg3[%c0_6, %c0_7] : memref<50x150xbf16, #tpu.memory_space<vmem>>, vector<50x150xbf16>
    %cst_8 = arith.constant dense<0.000000e+00> : vector<50x16xf32>
    %7 = tpu.matmul %6, %0, %cst_8 {dimension_numbers = #tpu.dot_dimension_numbers<[1], [0], [0], [1], [0, 0, 1, 1], [], []>} : vector<50x150xbf16>, vector<150x16xbf16>, vector<50x16xf32> -> vector<50x16xf32>
    %8 = arith.maximumf %5, %7 : vector<50x16xf32>
    %c0_9 = arith.constant 0 : index
    %c0_10 = arith.constant 0 : index
    %9 = vector.load %arg4[%c0_9, %c0_10] : memref<50x150xbf16, #tpu.memory_space<vmem>>, vector<50x150xbf16>
    %cst_11 = arith.constant dense<0.000000e+00> : vector<50x16xf32>
    %10 = tpu.matmul %9, %0, %cst_11 {dimension_numbers = #tpu.dot_dimension_numbers<[1], [0], [0], [1], [0, 0, 1, 1], [], []>} : vector<50x150xbf16>, vector<150x16xbf16>, vector<50x16xf32> -> vector<50x16xf32>
    %11 = arith.maximumf %8, %10 : vector<50x16xf32>
    %c0_12 = arith.constant 0 : index
    %c0_13 = arith.constant 0 : index
    %12 = vector.load %arg6[%c0_12, %c0_13] : memref<1x16xf32, #tpu.memory_space<vmem>>, vector<1x16xf32>
    %13 = vector.broadcast %12 : vector<1x16xf32> to vector<50x16xf32>
    %14 = arith.addf %11, %13 : vector<50x16xf32>
    %cst_14 = arith.constant 0.000000e+00 : f32
    %15 = vector.broadcast %cst_14 : f32 to vector<50x16xf32>
    %16 = arith.maximumf %14, %15 : vector<50x16xf32>
    %17 = arith.truncf %16 : vector<50x16xf32> to vector<50x16xbf16>
    %c0_15 = arith.constant 0 : index
    %c0_16 = arith.constant 0 : index
    %18 = vector.load %arg7[%c0_15, %c0_16] : memref<50x16xbf16, #tpu.memory_space<vmem>>, vector<50x16xbf16>
    tpu.vector_store %arg7[%c0_15, %c0_16], %17 {strides = array<i32>} : memref<50x16xbf16, #tpu.memory_space<vmem>>, vector<50x16xbf16>,
    return
  }
  func.func @transform_0(%arg0: i32) -> (i32, i32) {
    %c0_i32 = arith.constant 0 : i32
    %c0_i32_0 = arith.constant 0 : i32
    return %arg0, %c0_i32 : i32, i32
  }
  func.func @transform_1(%arg0: i32) -> (i32, i32) {
    %c0_i32 = arith.constant 0 : i32
    %c0_i32_0 = arith.constant 0 : i32
    return %arg0, %c0_i32 : i32, i32
  }
  func.func @transform_2(%arg0: i32) -> (i32, i32) {
    %c0_i32 = arith.constant 0 : i32
    %c0_i32_0 = arith.constant 0 : i32
    return %arg0, %c0_i32 : i32, i32
  }
  func.func @transform_3(%arg0: i32) -> (i32, i32) {
    %c0_i32 = arith.constant 0 : i32
    %c0_i32_0 = arith.constant 0 : i32
    return %arg0, %c0_i32 : i32, i32
  }
  func.func @transform_4(%arg0: i32) -> (i32, i32) {
    %c0_i32 = arith.constant 0 : i32
    %c0_i32_0 = arith.constant 0 : i32
    %c0_i32_1 = arith.constant 0 : i32
    return %c0_i32, %c0_i32_0 : i32, i32
  }
  func.func @transform_5(%arg0: i32) -> (i32, i32) {
    %c0_i32 = arith.constant 0 : i32
    %c0_i32_0 = arith.constant 0 : i32
    %c0_i32_1 = arith.constant 0 : i32
    return %c0_i32, %c0_i32_0 : i32, i32
  }
  func.func @transform_6(%arg0: i32) -> (i32, i32) {
    %c0_i32 = arith.constant 0 : i32
    %c0_i32_0 = arith.constant 0 : i32
    return %arg0, %c0_i32 : i32, i32
  }
}

module attributes {stable_mosaic.version = 11 : i64} {
  func.func @_mlp_kernel(%arg0: i32, %arg1: memref<2x400xbf16, #tpu.memory_space<vmem>>, %arg2: memref<400x120xbf16, #tpu.memory_space<vmem>>, %arg3: memref<1x120xf32, #tpu.memory_space<vmem>>, %arg4: memref<120x84xbf16, #tpu.memory_space<vmem>>, %arg5: memref<1x84xf32, #tpu.memory_space<vmem>>, %arg6: memref<84x10xbf16, #tpu.memory_space<vmem>>, %arg7: memref<1x10xf32, #tpu.memory_space<vmem>>, %arg8: memref<2x10xf32, #tpu.memory_space<vmem>>) attributes {dimension_semantics = [#tpu.dimension_semantics<parallel>], iteration_bounds = array<i64: 1>, scalar_prefetch = 0 : i64, scratch_operands = 0 : i64, tpu.core_type = #tpu.core_type<tc>, window_params = [{transform_indices = @transform_0, window_bounds = array<i64: 2, 400>}, {pipeline_mode = #tpu.pipeline_mode<synchronous>, transform_indices = @transform_1, window_bounds = array<i64: 400, 120>}, {pipeline_mode = #tpu.pipeline_mode<synchronous>, transform_indices = @transform_2, window_bounds = array<i64: 1, 120>}, {pipeline_mode = #tpu.pipeline_mode<synchronous>, transform_indices = @transform_3, window_bounds = array<i64: 120, 84>}, {pipeline_mode = #tpu.pipeline_mode<synchronous>, transform_indices = @transform_4, window_bounds = array<i64: 1, 84>}, {pipeline_mode = #tpu.pipeline_mode<synchronous>, transform_indices = @transform_5, window_bounds = array<i64: 84, 10>}, {pipeline_mode = #tpu.pipeline_mode<synchronous>, transform_indices = @transform_6, window_bounds = array<i64: 1, 10>}, {transform_indices = @transform_7, window_bounds = array<i64: 2, 10>}]} {
    %c0 = arith.constant 0 : index
    %c0_0 = arith.constant 0 : index
    %0 = vector.load %arg1[%c0, %c0_0] : memref<2x400xbf16, #tpu.memory_space<vmem>>, vector<2x400xbf16>
    %c0_1 = arith.constant 0 : index
    %c0_2 = arith.constant 0 : index
    %1 = vector.load %arg2[%c0_1, %c0_2] : memref<400x120xbf16, #tpu.memory_space<vmem>>, vector<400x120xbf16>
    %cst = arith.constant dense<0.000000e+00> : vector<2x120xf32>
    %2 = tpu.matmul %0, %1, %cst {dimension_numbers = #tpu.dot_dimension_numbers<[1], [0], [0], [1], [0, 0, 1, 1], [], []>} : vector<2x400xbf16>, vector<400x120xbf16>, vector<2x120xf32> -> vector<2x120xf32>
    %c0_3 = arith.constant 0 : index
    %c0_4 = arith.constant 0 : index
    %3 = vector.load %arg3[%c0_3, %c0_4] : memref<1x120xf32, #tpu.memory_space<vmem>>, vector<1x120xf32>
    %4 = vector.broadcast %3 : vector<1x120xf32> to vector<2x120xf32>
    %5 = arith.addf %2, %4 : vector<2x120xf32>
    %cst_5 = arith.constant 0.000000e+00 : f32
    %6 = vector.broadcast %cst_5 : f32 to vector<2x120xf32>
    %7 = arith.maximumf %5, %6 : vector<2x120xf32>
    %8 = arith.truncf %7 : vector<2x120xf32> to vector<2x120xbf16>
    %c0_6 = arith.constant 0 : index
    %c0_7 = arith.constant 0 : index
    %9 = vector.load %arg4[%c0_6, %c0_7] : memref<120x84xbf16, #tpu.memory_space<vmem>>, vector<120x84xbf16>
    %cst_8 = arith.constant dense<0.000000e+00> : vector<2x84xf32>
    %10 = tpu.matmul %8, %9, %cst_8 {dimension_numbers = #tpu.dot_dimension_numbers<[1], [0], [0], [1], [0, 0, 1, 1], [], []>} : vector<2x120xbf16>, vector<120x84xbf16>, vector<2x84xf32> -> vector<2x84xf32>
    %c0_9 = arith.constant 0 : index
    %c0_10 = arith.constant 0 : index
    %11 = vector.load %arg5[%c0_9, %c0_10] : memref<1x84xf32, #tpu.memory_space<vmem>>, vector<1x84xf32>
    %12 = vector.broadcast %11 : vector<1x84xf32> to vector<2x84xf32>
    %13 = arith.addf %10, %12 : vector<2x84xf32>
    %cst_11 = arith.constant 0.000000e+00 : f32
    %14 = vector.broadcast %cst_11 : f32 to vector<2x84xf32>
    %15 = arith.maximumf %13, %14 : vector<2x84xf32>
    %16 = arith.truncf %15 : vector<2x84xf32> to vector<2x84xbf16>
    %c0_12 = arith.constant 0 : index
    %c0_13 = arith.constant 0 : index
    %17 = vector.load %arg6[%c0_12, %c0_13] : memref<84x10xbf16, #tpu.memory_space<vmem>>, vector<84x10xbf16>
    %cst_14 = arith.constant dense<0.000000e+00> : vector<2x10xf32>
    %18 = tpu.matmul %16, %17, %cst_14 {dimension_numbers = #tpu.dot_dimension_numbers<[1], [0], [0], [1], [0, 0, 1, 1], [], []>} : vector<2x84xbf16>, vector<84x10xbf16>, vector<2x10xf32> -> vector<2x10xf32>
    %c0_15 = arith.constant 0 : index
    %c0_16 = arith.constant 0 : index
    %19 = vector.load %arg7[%c0_15, %c0_16] : memref<1x10xf32, #tpu.memory_space<vmem>>, vector<1x10xf32>
    %20 = vector.broadcast %19 : vector<1x10xf32> to vector<2x10xf32>
    %21 = arith.addf %18, %20 : vector<2x10xf32>
    %c0_17 = arith.constant 0 : index
    %c0_18 = arith.constant 0 : index
    %22 = vector.load %arg8[%c0_17, %c0_18] : memref<2x10xf32, #tpu.memory_space<vmem>>, vector<2x10xf32>
    tpu.vector_store %arg8[%c0_17, %c0_18], %21 {strides = array<i32>} : memref<2x10xf32, #tpu.memory_space<vmem>>, vector<2x10xf32>,
    return
  }
  func.func @transform_0(%arg0: i32) -> (i32, i32) {
    %c0_i32 = arith.constant 0 : i32
    %c0_i32_0 = arith.constant 0 : i32
    return %arg0, %c0_i32 : i32, i32
  }
  func.func @transform_1(%arg0: i32) -> (i32, i32) {
    %c0_i32 = arith.constant 0 : i32
    %c0_i32_0 = arith.constant 0 : i32
    %c0_i32_1 = arith.constant 0 : i32
    return %c0_i32, %c0_i32_0 : i32, i32
  }
  func.func @transform_2(%arg0: i32) -> (i32, i32) {
    %c0_i32 = arith.constant 0 : i32
    %c0_i32_0 = arith.constant 0 : i32
    %c0_i32_1 = arith.constant 0 : i32
    return %c0_i32, %c0_i32_0 : i32, i32
  }
  func.func @transform_3(%arg0: i32) -> (i32, i32) {
    %c0_i32 = arith.constant 0 : i32
    %c0_i32_0 = arith.constant 0 : i32
    %c0_i32_1 = arith.constant 0 : i32
    return %c0_i32, %c0_i32_0 : i32, i32
  }
  func.func @transform_4(%arg0: i32) -> (i32, i32) {
    %c0_i32 = arith.constant 0 : i32
    %c0_i32_0 = arith.constant 0 : i32
    %c0_i32_1 = arith.constant 0 : i32
    return %c0_i32, %c0_i32_0 : i32, i32
  }
  func.func @transform_5(%arg0: i32) -> (i32, i32) {
    %c0_i32 = arith.constant 0 : i32
    %c0_i32_0 = arith.constant 0 : i32
    %c0_i32_1 = arith.constant 0 : i32
    return %c0_i32, %c0_i32_0 : i32, i32
  }
  func.func @transform_6(%arg0: i32) -> (i32, i32) {
    %c0_i32 = arith.constant 0 : i32
    %c0_i32_0 = arith.constant 0 : i32
    %c0_i32_1 = arith.constant 0 : i32
    return %c0_i32, %c0_i32_0 : i32, i32
  }
  func.func @transform_7(%arg0: i32) -> (i32, i32) {
    %c0_i32 = arith.constant 0 : i32
    %c0_i32_0 = arith.constant 0 : i32
    return %arg0, %c0_i32 : i32, i32
  }
}

</mosaic_0001>

<bundles_post_ra>
// kernel: net_forward.3
= control target key start
LH: loop header
LB: loop body
LE: loop exit
PB: predicated region body
PF: predicated region fallthrough
CT: control target
= control target key end

     0   :  { %s2889_s21 = smov 0   ;;  %s2891_s22 = smov 0   ;;  %s3616_s0 = inlined_call_operand.vmem [shape: bf16[392,75], index: 0, kind: input, shape index: {}]   ;;  %s3617_s1 = inlined_call_operand.vmem [shape: bf16[392,75], index: 1, kind: input, shape index: {}]   ;;  %s3618_s2 = inlined_call_operand.vmem [shape: bf16[392,75], index: 2, kind: input, shape index: {}]   ;;  %s3619_s3 = inlined_call_operand.vmem [shape: bf16[392,75], index: 3, kind: input, shape index: {}]   ;;  %s3620_s4 = inlined_call_operand.vmem [shape: bf16[75,6], index: 4, kind: input, shape index: {}]   ;;  %s3621_s5 = inlined_call_operand.vmem [shape: f32[1,6], index: 5, kind: input, shape index: {}]   ;;  %s3622_s6 = inlined_call_operand.vmem [shape: bf16[392,6], index: 6, kind: output, shape index: {}]  }
   0x1   :  { %s2893_s23 = smov 0  }
   0x2 LB: > { %s2902_s24 = sadd.s32 4294967295, %s2817_s23   ;;  %s2904_s25 = sadd.s32 1, %s2817_s23   ;;  %s2817_s23 = sphi %s2893_s23, %s3658_s23   ;;  %s2813_s22 = sphi %s2891_s22, %s3657_s22   ;;  %s2809_s21 = sphi %s2889_s21, %s3656_s21  }
   0x3   : > { %s166_s26 = ssub.s32 %s2817_s23, %s2904_s25  ;;  %s169_s27 = sadd.s32 1, %s2813_s22 }
   0x4   : > { %p167_p0 = scmp.eq.s32.totalorder %s166_s26, 0  ;;  %p179_p1 = scmp.ne.s32.totalorder %s2813_s22, %s2809_s21 }
   0x5   : > { %p180_p2 = scmp.eq.s32.totalorder %s2902_s24, 1  ;;  %p2111_p3 = scmp.ge.s32.totalorder %s2817_s23, 1 }
   0x6   : > { %s2912_s28 = scalar_select %p167_p0, %s2813_s22, %s169_s27  }
   0x7   : > { %p2914_p4 = por %p180_p2, %p179_p1  ;;  %p278_p5 = scmp.lt.s32.totalorder %s2817_s23, 3 }
   0x9   : > { %p279_p6 = pnand %p2111_p3, %p278_p5 }
   0xb   : > { %282 = sbr.rel (%p279_p6) target bundleno = 514 (0x202), region = 44 }
  0x10   : > { %vm567_vm0 = vcmask 1044480   ;;  %v2851_v0 = vmov 0.0   ;;  %v2702_v1 = vld [vmem:[%s3620_s4 + $0x20] sm:$0x3f]   ;;  %vm568_vm1 = vcmask 1045504   ;;  %v2852_v2 = vmov 65535  }
  0x11   : > { %2361 = vmatprep.subr.bf16.mxu0 %v2851_v0  ;;  %2423 = vmatprep.subr.bf16.mxu1 %v2851_v0  ;;  %v569_v3 = vsel %vm567_vm0, 4294967295, %v2852_v2  ;;  %vm2853_vm2 = vmmov 0   ;;  %s2928_s8 = smul.u32 25, %s2902_s24  ;;  %v2703_v6 = vld [vmem:[%s3620_s4 + $0x18] sm:$0xff]   ;;  %v2704_v7 = vld [vmem:[%s3620_s4 + $0x10] sm:$0xff]   ;;  %v2705_v8 = vld [vmem:[%s3620_s4 + $0x8] sm:$0xff]  }
  0x12   : > { %v570_v4 = vsel %vm568_vm1, %v569_v3, 0  ;;  %2371 = vmatprep.mubr.msk.bf16.mxu0 %vm2853_vm2, %v2851_v0  ;;  %2433 = vmatprep.mubr.msk.bf16.mxu1 %vm2853_vm2, %v2851_v0  ;;  %v2706_v9 = vld [vmem:[%s3620_s4] sm:$0xff]   ;;  %vm527_vm3 = vcmask 613376   ;;  %vm1732_vm4 = vcmask 44032   ;;  %s2288_s19 = smul.u32 (%p2914_p4), 100, %s2902_s24 }
  0x13   : > { %v572_v5 = vand.u32 %v2702_v1, %v570_v4  ;;  %p343_p7 = scmp.lt.s32.totalorder %s2928_s8, 48  ;;  %s1766_s18 = ssub.s32 (%p2914_p4), 49, %s2928_s8 }
  0x14   : > { %p1767_p8 = scmp.lt.s32.totalorder (%p2914_p4), %s1766_s18, 25  ;;  %s3507_s26 = scalar_lea.vmem (%p2914_p4), %s3622_s6, %s2288_s19  }
  0x15   : > { %2362 = vmatpush3.bf16.msra.mxu0 %v572_v5  ;;  %2424 = vmatpush3.bf16.msra.mxu1 %v572_v5  ;;  %s344_s11 = scalar_select %p343_p7, %s2928_s8, 48 }
  0x16   : > { %2363 = vmatprep.subr.bf16.mxu0 %v2851_v0  ;;  %2425 = vmatprep.subr.bf16.mxu1 %v2851_v0 }
  0x17   : > { %s2942_s14 = sshll.u32 %s344_s11, 2 }
  0x18   : > { %s2948_s17 = scalar_lea.vmem %s3616_s0, %s2942_s14  ;;  %s2954_s20 = scalar_lea.vmem %s3617_s1, %s2942_s14 }
  0x19   : > { %2364 = vmatpush3.bf16.msra.mxu0 %v2703_v6  ;;  %2426 = vmatpush3.bf16.msra.mxu1 %v2703_v6  ;;  %v2707_v10 = vld [vmem:[%s2948_s17] sm:$0xff]   ;;  %v2709_v12 = vld [vmem:[%s2948_s17 + $0x8] sm:$0xff]   ;;  %v2711_v14 = vld [vmem:[%s2948_s17 + $0x10] sm:$0xff]   ;;  %s2995_s10 = scalar_lea.vmem %s3618_s2, %s2942_s14  ;;  %s3002_s13 = scalar_lea.vmem %s3619_s3, %s2942_s14 }
  0x1a   : > { %2365 = vmatprep.subr.bf16.mxu0 %v2851_v0  ;;  %2427 = vmatprep.subr.bf16.mxu1 %v2851_v0  ;;  %v2708_v11 = vld [vmem:[%s2954_s20] sm:$0xff]   ;;  %v2710_v13 = vld [vmem:[%s2954_s20 + $0x8] sm:$0xff]   ;;  %v2712_v15 = vld [vmem:[%s2954_s20 + $0x10] sm:$0xff]   ;;  %s335_s14 = sand.u32 1, %s2809_s21  }
  0x1b   : > { %v2713_v16 = vld [vmem:[%s2948_s17 + $0x18] sm:$0xff]   ;;  %v2715_v18 = vld [vmem:[%s2948_s17 + $0x20] sm:$0xff]   ;;  %v2717_v20 = vld [vmem:[%s2948_s17 + $0x28] sm:$0xff]  }
  0x1c   : > { %v2714_v17 = vld [vmem:[%s2954_s20 + $0x18] sm:$0xff]   ;;  %v2716_v19 = vld [vmem:[%s2954_s20 + $0x20] sm:$0xff]   ;;  %v2718_v21 = vld [vmem:[%s2954_s20 + $0x28] sm:$0xff]  }
  0x1d   : > { %2366 = vmatpush3.bf16.msra.mxu0 %v2704_v7  ;;  %2428 = vmatpush3.bf16.msra.mxu1 %v2704_v7  ;;  %v2719_v22 = vld [vmem:[%s2948_s17 + $0x30] sm:$0xff]   ;;  %v2721_v24 = vld [vmem:[%s2948_s17 + $0x38] sm:$0xff]   ;;  %v2723_v26 = vld [vmem:[%s2948_s17 + $0x40] sm:$0xff]  }
  0x1e   : > { %2367 = vmatprep.subr.bf16.mxu0 %v2851_v0  ;;  %2429 = vmatprep.subr.bf16.mxu1 %v2851_v0  ;;  %v2720_v23 = vld [vmem:[%s2954_s20 + $0x30] sm:$0xff]   ;;  %v2722_v25 = vld [vmem:[%s2954_s20 + $0x38] sm:$0xff]   ;;  %v2724_v27 = vld [vmem:[%s2954_s20 + $0x40] sm:$0xff]  }
  0x1f   : > { %v2725_v28 = vld [vmem:[%s2948_s17 + $0x48] sm:$0xff]   ;;  %v2727_v30 = vld [vmem:[%s2948_s17 + $0x50] sm:$0xff]   ;;  %v2729_v32 = vld [vmem:[%s2948_s17 + $0x58] sm:$0xff]  }
  0x20   : > { %v2726_v29 = vld [vmem:[%s2954_s20 + $0x48] sm:$0xff]   ;;  %v2728_v31 = vld [vmem:[%s2954_s20 + $0x50] sm:$0xff]   ;;  %v2730_v33 = vld [vmem:[%s2954_s20 + $0x58] sm:$0xff]  }
  0x21   : > { %2368 = vmatpush3.bf16.msra.mxu0 %v2705_v8  ;;  %2430 = vmatpush3.bf16.msra.mxu1 %v2705_v8  ;;  %v2731_v34 = vld [vmem:[%s2948_s17 + $0x60] ss:$0 sps:$4 sm:$0xff]   ;;  %v2735_v38 = vld [vmem:[%s2995_s10 + $0x8] sm:$0xff]   ;;  %v2737_v40 = vld [vmem:[%s2995_s10 + $0x10] sm:$0xff]   ;;  %s2609_s17 = smul.u32 100, %s335_s14 }
  0x22   : > { %2369 = vmatprep.subr.bf16.mxu0 %v2851_v0  ;;  %2431 = vmatprep.subr.bf16.mxu1 %v2851_v0  ;;  %v2732_v35 = vld [vmem:[%s2954_s20 + $0x60] ss:$0 sps:$4 sm:$0xff]   ;;  %v2736_v39 = vld [vmem:[%s3002_s13 + $0x8] sm:$0xff]   ;;  %v2738_v41 = vld [vmem:[%s3002_s13 + $0x10] sm:$0xff]  }
  0x23   : > { %v2733_v36 = vld [vmem:[%s2995_s10] sm:$0xff]   ;;  %v2739_v42 = vld [vmem:[%s2995_s10 + $0x18] sm:$0xff]   ;;  %v2743_v46 = vld [vmem:[%s2995_s10 + $0x28] sm:$0xff]   ;;  %s3359_s21 = scalar_lea.vmem [#allocation2], %s2609_s17  }
  0x24   : > { %v2734_v37 = vld [vmem:[%s3002_s13] sm:$0xff]   ;;  %v2740_v43 = vld [vmem:[%s3002_s13 + $0x18] sm:$0xff]   ;;  %v2744_v47 = vld [vmem:[%s3002_s13 + $0x28] sm:$0xff]  }
  0x25   : > { %2370 = vmatpush3.bf16.msra.mxu0 %v2706_v9  ;;  %2432 = vmatpush3.bf16.msra.mxu1 %v2706_v9  ;;  %v2741_v44 = vld [vmem:[%s2995_s10 + $0x20] sm:$0xff]   ;;  %v2745_v48 = vld [vmem:[%s2995_s10 + $0x30] sm:$0xff]   ;;  %v2747_v50 = vld [vmem:[%s2995_s10 + $0x38] sm:$0xff]  }
  0x26   : > { %2485 = vmatprep.subr.bf16.mxu0 %v2851_v0  ;;  %2547 = vmatprep.subr.bf16.mxu1 %v2851_v0  ;;  %v2742_v45 = vld [vmem:[%s3002_s13 + $0x20] sm:$0xff]   ;;  %v2746_v49 = vld [vmem:[%s3002_s13 + $0x30] sm:$0xff]   ;;  %v2748_v51 = vld [vmem:[%s3002_s13 + $0x38] sm:$0xff]  }
  0x27   : > { %v2749_v52 = vld [vmem:[%s2995_s10 + $0x40] sm:$0xff]   ;;  %v2751_v54 = vld [vmem:[%s2995_s10 + $0x48] sm:$0xff]   ;;  %v2753_v56 = vld [vmem:[%s2995_s10 + $0x50] sm:$0xff]  }
  0x28   : > { %2372 = vmatmul.mubr.msk.bf16.vlgmr.msra.gmra.mxu0 %vm527_vm3, %v2707_v10  ;;  %2434 = vmatmul.mubr.msk.bf16.vlgmr.msra.gmra.mxu1 %vm527_vm3, %v2708_v11  ;;  %v2750_v53 = vld [vmem:[%s3002_s13 + $0x40] sm:$0xff]   ;;  %v2752_v55 = vld [vmem:[%s3002_s13 + $0x48] sm:$0xff]   ;;  %v2754_v57 = vld [vmem:[%s3002_s13 + $0x50] sm:$0xff]  }
  0x29   : > { %2486 = vmatpush3.bf16.msra.mxu0 %v572_v5  ;;  %2548 = vmatpush3.bf16.msra.mxu1 %v572_v5  ;;  %v2755_v58 = vld [vmem:[%s2995_s10 + $0x58] sm:$0xff]   ;;  %v2757_v4 = vld [vmem:[%s2995_s10 + $0x60] ss:$0 sps:$4 sm:$0xff]  }
  0x2a   : > { %2375 = vmatprep.mubr.msk.bf16.mxu0 %vm2853_vm2, %v2851_v0  ;;  %2437 = vmatprep.mubr.msk.bf16.mxu1 %vm2853_vm2, %v2851_v0  ;;  %v2756_v59 = vld [vmem:[%s3002_s13 + $0x58] sm:$0xff]   ;;  %v2758_v5 = vld [vmem:[%s3002_s13 + $0x60] ss:$0 sps:$4 sm:$0xff]  }
  0x2b   : > { %2487 = vmatprep.subr.bf16.mxu0 %v2851_v0  ;;  %2549 = vmatprep.subr.bf16.mxu1 %v2851_v0 }
  0x2d   : > { %2488 = vmatpush3.bf16.msra.mxu0 %v2703_v6  ;;  %2550 = vmatpush3.bf16.msra.mxu1 %v2703_v6 }
  0x2e   : > { %2489 = vmatprep.subr.bf16.mxu0 %v2851_v0  ;;  %2551 = vmatprep.subr.bf16.mxu1 %v2851_v0 }
  0x30   : > { %2376 = vmatmul.mubr.msk.bf16.gmra.mxu0 %vm527_vm3, %v2709_v12  ;;  %2438 = vmatmul.mubr.msk.bf16.gmra.mxu1 %vm527_vm3, %v2710_v13 }
  0x31   : > { %2379 = vmatprep.mubr.msk.bf16.mxu0 %vm2853_vm2, %v2851_v0  ;;  %2441 = vmatprep.mubr.msk.bf16.mxu1 %vm2853_vm2, %v2851_v0 }
  0x32   : > { %2490 = vmatpush3.bf16.msra.mxu0 %v2704_v7  ;;  %2552 = vmatpush3.bf16.msra.mxu1 %v2704_v7 }
  0x33   : > { %2491 = vmatprep.subr.bf16.mxu0 %v2851_v0  ;;  %2553 = vmatprep.subr.bf16.mxu1 %v2851_v0 }
  0x36   : > { %2492 = vmatpush3.bf16.msra.mxu0 %v2705_v8  ;;  %2554 = vmatpush3.bf16.msra.mxu1 %v2705_v8 }
  0x37   : > { %2493 = vmatprep.subr.bf16.mxu0 %v2851_v0  ;;  %2555 = vmatprep.subr.bf16.mxu1 %v2851_v0 }
  0x38   : > { %2380 = vmatmul.mubr.msk.bf16.gmra.mxu0 %vm527_vm3, %v2711_v14  ;;  %2442 = vmatmul.mubr.msk.bf16.gmra.mxu1 %vm527_vm3, %v2712_v15 }
  0x39   : > { %2383 = vmatprep.mubr.msk.bf16.mxu0 %vm2853_vm2, %v2851_v0  ;;  %2445 = vmatprep.mubr.msk.bf16.mxu1 %vm2853_vm2, %v2851_v0 }
  0x3a   : > { %2494 = vmatpush3.bf16.msra.mxu0 %v2706_v9  ;;  %2556 = vmatpush3.bf16.msra.mxu1 %v2706_v9 }
  0x40   : > { %2384 = vmatmul.mubr.msk.bf16.gmra.mxu0 %vm527_vm3, %v2713_v16  ;;  %2446 = vmatmul.mubr.msk.bf16.gmra.mxu1 %vm527_vm3, %v2714_v17 }
  0x41   : > { %2387 = vmatprep.mubr.msk.bf16.mxu0 %vm2853_vm2, %v2851_v0  ;;  %2449 = vmatprep.mubr.msk.bf16.mxu1 %vm2853_vm2, %v2851_v0 }
  0x48   : > { %2388 = vmatmul.mubr.msk.bf16.gmra.mxu0 %vm527_vm3, %v2715_v18  ;;  %2450 = vmatmul.mubr.msk.bf16.gmra.mxu1 %vm527_vm3, %v2716_v19 }
  0x49   : > { %2391 = vmatprep.mubr.msk.bf16.mxu0 %vm2853_vm2, %v2851_v0  ;;  %2453 = vmatprep.mubr.msk.bf16.mxu1 %vm2853_vm2, %v2851_v0 }
  0x50   : > { %2392 = vmatmul.mubr.msk.bf16.gmra.mxu0 %vm527_vm3, %v2717_v20  ;;  %2454 = vmatmul.mubr.msk.bf16.gmra.mxu1 %vm527_vm3, %v2718_v21 }
  0x51   : > { %2395 = vmatprep.mubr.msk.bf16.mxu0 %vm2853_vm2, %v2851_v0  ;;  %2457 = vmatprep.mubr.msk.bf16.mxu1 %vm2853_vm2, %v2851_v0 }
  0x58   : > { %2396 = vmatmul.mubr.msk.bf16.gmra.mxu0 %vm527_vm3, %v2719_v22  ;;  %2458 = vmatmul.mubr.msk.bf16.gmra.mxu1 %vm527_vm3, %v2720_v23 }
  0x59   : > { %2399 = vmatprep.mubr.msk.bf16.mxu0 %vm2853_vm2, %v2851_v0  ;;  %2461 = vmatprep.mubr.msk.bf16.mxu1 %vm2853_vm2, %v2851_v0 }
  0x60   : > { %2400 = vmatmul.mubr.msk.bf16.gmra.mxu0 %vm527_vm3, %v2721_v24  ;;  %2462 = vmatmul.mubr.msk.bf16.gmra.mxu1 %vm527_vm3, %v2722_v25 }
  0x61   : > { %2403 = vmatprep.mubr.msk.bf16.mxu0 %vm2853_vm2, %v2851_v0  ;;  %2465 = vmatprep.mubr.msk.bf16.mxu1 %vm2853_vm2, %v2851_v0 }
  0x68   : > { %2404 = vmatmul.mubr.msk.bf16.gmra.mxu0 %vm527_vm3, %v2723_v26  ;;  %2466 = vmatmul.mubr.msk.bf16.gmra.mxu1 %vm527_vm3, %v2724_v27 }
  0x69   : > { %2407 = vmatprep.mubr.msk.bf16.mxu0 %vm2853_vm2, %v2851_v0  ;;  %2469 = vmatprep.mubr.msk.bf16.mxu1 %vm2853_vm2, %v2851_v0 }
  0x70   : > { %2408 = vmatmul.mubr.msk.bf16.gmra.mxu0 %vm527_vm3, %v2725_v28  ;;  %2470 = vmatmul.mubr.msk.bf16.gmra.mxu1 %vm527_vm3, %v2726_v29 }
  0x71   : > { %2411 = vmatprep.mubr.msk.bf16.mxu0 %vm2853_vm2, %v2851_v0  ;;  %2473 = vmatprep.mubr.msk.bf16.mxu1 %vm2853_vm2, %v2851_v0 }
  0x78   : > { %2412 = vmatmul.mubr.msk.bf16.gmra.mxu0 %vm527_vm3, %v2727_v30  ;;  %2474 = vmatmul.mubr.msk.bf16.gmra.mxu1 %vm527_vm3, %v2728_v31 }
  0x79   : > { %2415 = vmatprep.mubr.msk.bf16.mxu0 %vm2853_vm2, %v2851_v0  ;;  %2477 = vmatprep.mubr.msk.bf16.mxu1 %vm2853_vm2, %v2851_v0 }
  0x80   : > { %2416 = vmatmul.mubr.msk.bf16.gmra.mxu0 %vm527_vm3, %v2729_v32  ;;  %2478 = vmatmul.mubr.msk.bf16.gmra.mxu1 %vm527_vm3, %v2730_v33 }
  0x81   : > { %2419 = vmatprep.mubr.msk.bf16.mxu0 %vm2853_vm2, %v2851_v0  ;;  %2481 = vmatprep.mubr.msk.bf16.mxu1 %vm2853_vm2, %v2851_v0 }
  0x88   : > { %2420 = vmatmul.mubr.msk.bf16.gmra.mxu0 %vm527_vm3, %v2731_v34  ;;  %2482 = vmatmul.mubr.msk.bf16.gmra.mxu1 %vm527_vm3, %v2732_v35 }
  0x89   : > { %2495 = vmatprep.mubr.msk.bf16.mxu0 %vm2853_vm2, %v2851_v0  ;;  %2557 = vmatprep.mubr.msk.bf16.mxu1 %vm2853_vm2, %v2851_v0 }
  0x90   : > { %2496 = vmatmul.mubr.msk.bf16.vlgmr.msra.gmra.mxu0 %vm527_vm3, %v2733_v36  ;;  %2558 = vmatmul.mubr.msk.bf16.vlgmr.msra.gmra.mxu1 %vm527_vm3, %v2734_v37 }
  0x91   : > { %2499 = vmatprep.mubr.msk.bf16.mxu0 %vm2853_vm2, %v2851_v0  ;;  %2561 = vmatprep.mubr.msk.bf16.mxu1 %vm2853_vm2, %v2851_v0 }
  0x98   : > { %2500 = vmatmul.mubr.msk.bf16.gmra.mxu0 %vm527_vm3, %v2735_v38  ;;  %2562 = vmatmul.mubr.msk.bf16.gmra.mxu1 %vm527_vm3, %v2736_v39 }
  0x99   : > { %2503 = vmatprep.mubr.msk.bf16.mxu0 %vm2853_vm2, %v2851_v0  ;;  %2565 = vmatprep.mubr.msk.bf16.mxu1 %vm2853_vm2, %v2851_v0 }
  0xa0   : > { %2504 = vmatmul.mubr.msk.bf16.gmra.mxu0 %vm527_vm3, %v2737_v40  ;;  %2566 = vmatmul.mubr.msk.bf16.gmra.mxu1 %vm527_vm3, %v2738_v41 }
  0xa1   : > { %2507 = vmatprep.mubr.msk.bf16.mxu0 %vm2853_vm2, %v2851_v0  ;;  %2569 = vmatprep.mubr.msk.bf16.mxu1 %vm2853_vm2, %v2851_v0 }
  0xa8   : > { %2508 = vmatmul.mubr.msk.bf16.gmra.mxu0 %vm527_vm3, %v2739_v42  ;;  %2570 = vmatmul.mubr.msk.bf16.gmra.mxu1 %vm527_vm3, %v2740_v43 }
  0xa9   : > { %2511 = vmatprep.mubr.msk.bf16.mxu0 %vm2853_vm2, %v2851_v0  ;;  %2573 = vmatprep.mubr.msk.bf16.mxu1 %vm2853_vm2, %v2851_v0 }
  0xb0   : > { %2512 = vmatmul.mubr.msk.bf16.gmra.mxu0 %vm527_vm3, %v2741_v44  ;;  %2574 = vmatmul.mubr.msk.bf16.gmra.mxu1 %vm527_vm3, %v2742_v45 }
  0xb1   : > { %2515 = vmatprep.mubr.msk.bf16.mxu0 %vm2853_vm2, %v2851_v0  ;;  %2577 = vmatprep.mubr.msk.bf16.mxu1 %vm2853_vm2, %v2851_v0 }
  0xb8   : > { %2516 = vmatmul.mubr.msk.bf16.gmra.mxu0 %vm527_vm3, %v2743_v46  ;;  %2578 = vmatmul.mubr.msk.bf16.gmra.mxu1 %vm527_vm3, %v2744_v47 }
  0xb9   : > { %2519 = vmatprep.mubr.msk.bf16.mxu0 %vm2853_vm2, %v2851_v0  ;;  %2581 = vmatprep.mubr.msk.bf16.mxu1 %vm2853_vm2, %v2851_v0 }
  0xc0   : > { %2520 = vmatmul.mubr.msk.bf16.gmra.mxu0 %vm527_vm3, %v2745_v48  ;;  %2582 = vmatmul.mubr.msk.bf16.gmra.mxu1 %vm527_vm3, %v2746_v49 }
  0xc1   : > { %2523 = vmatprep.mubr.msk.bf16.mxu0 %vm2853_vm2, %v2851_v0  ;;  %2585 = vmatprep.mubr.msk.bf16.mxu1 %vm2853_vm2, %v2851_v0 }
  0xc8   : > { %2524 = vmatmul.mubr.msk.bf16.gmra.mxu0 %vm527_vm3, %v2747_v50  ;;  %2586 = vmatmul.mubr.msk.bf16.gmra.mxu1 %vm527_vm3, %v2748_v51 }
  0xc9   : > { %2527 = vmatprep.mubr.msk.bf16.mxu0 %vm2853_vm2, %v2851_v0  ;;  %2589 = vmatprep.mubr.msk.bf16.mxu1 %vm2853_vm2, %v2851_v0 }
  0xd0   : > { %2528 = vmatmul.mubr.msk.bf16.gmra.mxu0 %vm527_vm3, %v2749_v52  ;;  %2590 = vmatmul.mubr.msk.bf16.gmra.mxu1 %vm527_vm3, %v2750_v53 }
  0xd1   : > { %2531 = vmatprep.mubr.msk.bf16.mxu0 %vm2853_vm2, %v2851_v0  ;;  %2593 = vmatprep.mubr.msk.bf16.mxu1 %vm2853_vm2, %v2851_v0 }
  0xd8   : > { %2532 = vmatmul.mubr.msk.bf16.gmra.mxu0 %vm527_vm3, %v2751_v54  ;;  %2594 = vmatmul.mubr.msk.bf16.gmra.mxu1 %vm527_vm3, %v2752_v55 }
  0xd9   : > { %2535 = vmatprep.mubr.msk.bf16.mxu0 %vm2853_vm2, %v2851_v0  ;;  %2597 = vmatprep.mubr.msk.bf16.mxu1 %vm2853_vm2, %v2851_v0 }
  0xe0   : > { %2536 = vmatmul.mubr.msk.bf16.gmra.mxu0 %vm527_vm3, %v2753_v56  ;;  %2598 = vmatmul.mubr.msk.bf16.gmra.mxu1 %vm527_vm3, %v2754_v57 }
  0xe1   : > { %2539 = vmatprep.mubr.msk.bf16.mxu0 %vm2853_vm2, %v2851_v0  ;;  %2601 = vmatprep.mubr.msk.bf16.mxu1 %vm2853_vm2, %v2851_v0 }
  0xe8   : > { %v3182_v60 = vpop.f32.mrf.mxu0  ;;  %v3184_v61 = vpop.f32.mrf.mxu1  ;;  %2540 = vmatmul.mubr.msk.bf16.gmra.mxu0 %vm527_vm3, %v2755_v58  ;;  %2602 = vmatmul.mubr.msk.bf16.gmra.mxu1 %vm527_vm3, %v2756_v59 }
  0xe9   : > { %v973_v62 = vmax.f32 %v3182_v60, %v3184_v61  ;;  %2543 = vmatprep.mubr.msk.bf16.mxu0 %vm2853_vm2, %v2851_v0  ;;  %2605 = vmatprep.mubr.msk.bf16.mxu1 %vm2853_vm2, %v2851_v0 }
  0xea   : > { %v2373_v63 = vpop.f32.mrf.mxu0  ;;  %v2435_v1 = vpop.f32.mrf.mxu1 }
  0xec   : > { %v3194_v2 = vpop.f32.mrf.mxu0  ;;  %v3196_v3 = vpop.f32.mrf.mxu1 }
  0xed   : > { %v974_v6 = vmax.f32 %v3194_v2, %v3196_v3 }
  0xee   : > { %v2374_v7 = vpop.f32.mrf.mxu0  ;;  %v2436_v8 = vpop.f32.mrf.mxu1 }
  0xf0   : > { %v3202_v9 = vpop.f32.mrf.mxu0  ;;  %v3204_v10 = vpop.f32.mrf.mxu1  ;;  %2544 = vmatmul.mubr.msk.bf16.gmra.mxu0 %vm527_vm3, %v2757_v4  ;;  %2606 = vmatmul.mubr.msk.bf16.gmra.mxu1 %vm527_vm3, %v2758_v5 }
  0xf2   : > { %v2377_v11 = vpop.f32.mrf.mxu0  ;;  %v2439_v12 = vpop.f32.mrf.mxu1 }
  0xf4   : > { %v3210_v13 = vpop.f32.mrf.mxu0  ;;  %v3212_v14 = vpop.f32.mrf.mxu1 }
  0xf6   : > { %v2378_v16 = vpop.f32.mrf.mxu0  ;;  %v2440_v17 = vpop.f32.mrf.mxu1 }
  0xf8   : > { %v3216_v18 = vpop.f32.mrf.mxu0  ;;  %v3218_v19 = vpop.f32.mrf.mxu1 }
  0xfa   : > { %v2381_v21 = vpop.f32.mrf.mxu0  ;;  %v2443_v22 = vpop.f32.mrf.mxu1 }
  0xfc   : > { %v3222_v23 = vpop.f32.mrf.mxu0  ;;  %v3224_v24 = vpop.f32.mrf.mxu1 }
  0xfe   : > { %v2382_v26 = vpop.f32.mrf.mxu0  ;;  %v2444_v27 = vpop.f32.mrf.mxu1 }
 0x100   : > { %v3228_v28 = vpop.f32.mrf.mxu0  ;;  %v3230_v29 = vpop.f32.mrf.mxu1 }
 0x102   : > { %v2385_v31 = vpop.f32.mrf.mxu0  ;;  %v2447_v32 = vpop.f32.mrf.mxu1 }
 0x104   : > { %v3234_v33 = vpop.f32.mrf.mxu0  ;;  %v3236_v34 = vpop.f32.mrf.mxu1 }
 0x106   : > { %v2386_v36 = vpop.f32.mrf.mxu0  ;;  %v2448_v37 = vpop.f32.mrf.mxu1 }
 0x108   : > { %v3240_v38 = vpop.f32.mrf.mxu0  ;;  %v3242_v39 = vpop.f32.mrf.mxu1 }
 0x10a   : > { %v2389_v41 = vpop.f32.mrf.mxu0  ;;  %v2451_v42 = vpop.f32.mrf.mxu1 }
 0x10c   : > { %v3246_v43 = vpop.f32.mrf.mxu0  ;;  %v3248_v44 = vpop.f32.mrf.mxu1 }
 0x10e   : > { %v2390_v46 = vpop.f32.mrf.mxu0  ;;  %v2452_v47 = vpop.f32.mrf.mxu1 }
 0x110   : > { %v3252_v48 = vpop.f32.mrf.mxu0  ;;  %v3254_v49 = vpop.f32.mrf.mxu1 }
 0x112   : > { %v2393_v51 = vpop.f32.mrf.mxu0  ;;  %v2455_v52 = vpop.f32.mrf.mxu1 }
 0x114   : > { %v3258_v53 = vpop.f32.mrf.mxu0  ;;  %v3260_v54 = vpop.f32.mrf.mxu1 }
 0x116   : > { %v2394_v56 = vpop.f32.mrf.mxu0  ;;  %v2456_v57 = vpop.f32.mrf.mxu1 }
 0x118   : > { %v3264_v58 = vpop.f32.mrf.mxu0  ;;  %v3266_v59 = vpop.f32.mrf.mxu1 }
 0x11a   : > { %v2397_v1 = vpop.f32.mrf.mxu0  ;;  %v2459_v4 = vpop.f32.mrf.mxu1 }
 0x11c   : > { %v3270_v5 = vpop.f32.mrf.mxu0  ;;  %v3272_v7 = vpop.f32.mrf.mxu1 }
 0x11e   : > { %v2398_v11 = vpop.f32.mrf.mxu0  ;;  %v2460_v12 = vpop.f32.mrf.mxu1 }
 0x120   : > { %v3276_v16 = vpop.f32.mrf.mxu0  ;;  %v3278_v17 = vpop.f32.mrf.mxu1 }
 0x122   : > { %v2401_v22 = vpop.f32.mrf.mxu0  ;;  %v2463_v26 = vpop.f32.mrf.mxu1 }
 0x124   : > { %v3282_v27 = vpop.f32.mrf.mxu0  ;;  %v3284_v31 = vpop.f32.mrf.mxu1 }
 0x126   : > { %v2402_v36 = vpop.f32.mrf.mxu0  ;;  %v2464_v37 = vpop.f32.mrf.mxu1 }
 0x128   : > { %v3288_v41 = vpop.f32.mrf.mxu0  ;;  %v3290_v42 = vpop.f32.mrf.mxu1 }
 0x12a   : > { %v2405_v47 = vpop.f32.mrf.mxu0  ;;  %v2467_v51 = vpop.f32.mrf.mxu1 }
 0x12c   : > { %v3294_v52 = vpop.f32.mrf.mxu0  ;;  %v3296_v56 = vpop.f32.mrf.mxu1 }
 0x12e   : > { %v2406_v1 = vpop.f32.mrf.mxu0  ;;  %v2468_v4 = vpop.f32.mrf.mxu1 }
 0x130   : > { %v3300_v11 = vpop.f32.mrf.mxu0  ;;  %v3302_v12 = vpop.f32.mrf.mxu1 }
 0x132   : > { %v2409_v26 = vpop.f32.mrf.mxu0  ;;  %v2471_v36 = vpop.f32.mrf.mxu1 }
 0x134   : > { %v3306_v37 = vpop.f32.mrf.mxu0  ;;  %v3308_v47 = vpop.f32.mrf.mxu1 }
 0x136   : > { %v2410_v46 = vpop.f32.mrf.mxu0  ;;  %v2472_v57 = vpop.f32.mrf.mxu1 }
 0x138   : > { %v3312_v1 = vpop.f32.mrf.mxu0  ;;  %v3314_v4 = vpop.f32.mrf.mxu1 }
 0x13a   : > { %v2413_v21 = vpop.f32.mrf.mxu0  ;;  %v2475_v22 = vpop.f32.mrf.mxu1 }
 0x13c   : > { %v3318_v26 = vpop.f32.mrf.mxu0  ;;  %v3320_v36 = vpop.f32.mrf.mxu1 }
 0x13e   : > { %v2414_v63 = vpop.f32.mrf.mxu0  ;;  %v2476_v51 = vpop.f32.mrf.mxu1 }
 0x140   : > { %v3324_v46 = vpop.f32.mrf.mxu0  ;;  %v3326_v57 = vpop.f32.mrf.mxu1 }
 0x142   : > { %v2417_v50 = vpop.f32.mrf.mxu0  ;;  %v2479_v32 = vpop.f32.mrf.mxu1 }
 0x144   : > { %v3330_v21 = vpop.f32.mrf.mxu0  ;;  %v3332_v22 = vpop.f32.mrf.mxu1 }
 0x146   : > { %v2418_v8 = vpop.f32.mrf.mxu0  ;;  %v2480_v63 = vpop.f32.mrf.mxu1 }
 0x147   : > { %v3349_v63 = vld [vmem:[%s3621_s5] ss:$0 sm:$0xff] }
 0x148   : > { %v3336_v51 = vpop.f32.mrf.mxu0  ;;  %v3338_v40 = vpop.f32.mrf.mxu1 }
 0x149   : > { %3626 = vst [vmem:[#allocation3_spill] sm:$0xff] %v3336_v51  ;;  %3627 = vst [vmem:[#allocation4_spill] sm:$0xff] %v3338_v40 }
 0x14a   : > { %v2421_v55 = vpop.f32.mrf.mxu0  ;;  %v2483_v50 = vpop.f32.mrf.mxu1 }
 0x14c   : > { %v707_v32 = vpop.f32.mrf.mxu0  ;;  %v970_v30 = vpop.f32.mrf.mxu1 }
 0x14e   : > { %v2422_v25 = vpop.f32.mrf.mxu0  ;;  %v2484_v20 = vpop.f32.mrf.mxu1 }
 0x150   : > { %v1159_v15 = vpop.f32.mrf.mxu0  ;;  %v1447_v0 = vpop.f32.mrf.mxu1 }
 0x151   : > { %v1261_v8 = vmax.f32 %v973_v62, %v1159_v15 }
 0x152   : > { %v2497_v45 = vpop.f32.mrf.mxu0  ;;  %v2559_v35 = vpop.f32.mrf.mxu1 }
 0x153   : > { %v1549_v55 = vmax.f32 %v1261_v8, %v1447_v0  ;;  %v3628_v0 = vmax.f32 %v3202_v9, %v3204_v10  ;;  %v3629_v9 = vmax.f32 %v3210_v13, %v3212_v14 }
 0x154   : > { %v1162_v50 = vpop.f32.mrf.mxu0  ;;  %v1450_v30 = vpop.f32.mrf.mxu1 }
 0x155   : > { %v1581_v20 = vadd.f32 %v3349_v63, %v1549_v55  ;;  %v1262_v25 = vmax.f32 %v974_v6, %v1162_v50 }
 0x156   : > { %v2498_v60 = vpop.f32.mrf.mxu0  ;;  %v2560_v61 = vpop.f32.mrf.mxu1 }
 0x157   : > { %v1606_v62 = vmax.f32 %v1581_v20, 0.0  ;;  %v1550_v15 = vmax.f32 %v1262_v25, %v1450_v30 }
 0x158   : > { %v1167_v32 = vpop.f32.mrf.mxu0  ;;  %v1455_v40 = vpop.f32.mrf.mxu1 }
 0x159   : > { %v2263_v51 = vpack.c.bf16 %v1606_v62, %v1606_v62  ;;  %v1582_v35 = vadd.f32 %v3349_v63, %v1550_v15  ;;  %v1263_v45 = vmax.f32 %v3628_v0, %v1167_v32 }
 0x15a   : > { %v2501_v8 = vpop.f32.mrf.mxu0  ;;  %v2563_v55 = vpop.f32.mrf.mxu1 }
 0x15b   : > { %1733 = vst.msk [vmem:[%s3359_s21] sm:$0xf] %vm1732_vm4, %v2263_v51  ;;  %v1607_v2 = vmax.f32 %v1582_v35, 0.0  ;;  %v1551_v3 = vmax.f32 %v1263_v45, %v1455_v40  ;;  %v3630_v35 = vmax.f32 %v3216_v18, %v3218_v19 }
 0x15c   : > { %v1170_v6 = vpop.f32.mrf.mxu0  ;;  %v1458_v50 = vpop.f32.mrf.mxu1 }
 0x15d   : > { %v2264_v30 = vpack.c.bf16 %v1607_v2, %v1607_v2  ;;  %v1583_v20 = vadd.f32 %v3349_v63, %v1551_v3  ;;  %v1264_v10 = vmax.f32 %v3629_v9, %v1170_v6 }
 0x15e   : > { %v2502_v25 = vpop.f32.mrf.mxu0  ;;  %v2564_v60 = vpop.f32.mrf.mxu1 }
 0x15f   : > { %1734 = vst.msk [vmem:[%s3359_s21 + $0x4] sm:$0xf] %vm1732_vm4, %v2264_v30  ;;  %v1608_v61 = vmax.f32 %v1583_v20, 0.0  ;;  %v1552_v62 = vmax.f32 %v1264_v10, %v1458_v50  ;;  %v3631_v50 = vmax.f32 %v3222_v23, %v3224_v24 }
 0x160   : > { %v1175_v15 = vpop.f32.mrf.mxu0  ;;  %v1463_v51 = vpop.f32.mrf.mxu1 }
 0x161   : > { %v2265_v40 = vpack.c.bf16 %v1608_v61, %v1608_v61  ;;  %v1584_v32 = vadd.f32 %v3349_v63, %v1552_v62  ;;  %v1265_v0 = vmax.f32 %v3630_v35, %v1175_v15  ;;  %v3632_v62 = vmax.f32 %v3228_v28, %v3230_v29 }
 0x162   : > { %v2505_v45 = vpop.f32.mrf.mxu0  ;;  %v2567_v8 = vpop.f32.mrf.mxu1 }
 0x163   : > { %1735 = vst.msk [vmem:[%s3359_s21 + $0x8] sm:$0xf] %vm1732_vm4, %v2265_v40  ;;  %v1609_v13 = vmax.f32 %v1584_v32, 0.0  ;;  %v1553_v14 = vmax.f32 %v1265_v0, %v1463_v51  ;;  %v3633_v8 = vmax.f32 %v3234_v33, %v3236_v34 }
 0x164   : > { %v1178_v55 = vpop.f32.mrf.mxu0  ;;  %v1466_v2 = vpop.f32.mrf.mxu1 }
 0x165   : > { %v2266_v3 = vpack.c.bf16 %v1609_v13, %v1609_v13  ;;  %v1585_v6 = vadd.f32 %v3349_v63, %v1553_v14  ;;  %v1266_v30 = vmax.f32 %v3631_v50, %v1178_v55 }
 0x166   : > { %v2506_v20 = vpop.f32.mrf.mxu0  ;;  %v2568_v9 = vpop.f32.mrf.mxu1 }
 0x167   : > { %1736 = vst.msk [vmem:[%s3359_s21 + $0xc] sm:$0xf] %vm1732_vm4, %v2266_v3  ;;  %v1610_v18 = vmax.f32 %v1585_v6, 0.0  ;;  %v1554_v19 = vmax.f32 %v1266_v30, %v1466_v2  ;;  %v3634_v30 = vmax.f32 %v3240_v38, %v3242_v39 }
 0x168   : > { %v1183_v10 = vpop.f32.mrf.mxu0  ;;  %v1471_v25 = vpop.f32.mrf.mxu1 }
 0x169   : > { %v2267_v60 = vpack.c.bf16 %v1610_v18, %v1610_v18  ;;  %v1586_v61 = vadd.f32 %v3349_v63, %v1554_v19  ;;  %v1267_v15 = vmax.f32 %v3632_v62, %v1183_v10 }
 0x16a   : > { %v2509_v51 = vpop.f32.mrf.mxu0  ;;  %v2571_v40 = vpop.f32.mrf.mxu1 }
 0x16b   : > { %1737 = vst.msk [vmem:[%s3359_s21 + $0x10] sm:$0xf] %vm1732_vm4, %v2267_v60  ;;  %v1611_v23 = vmax.f32 %v1586_v61, 0.0  ;;  %v1555_v24 = vmax.f32 %v1267_v15, %v1471_v25  ;;  %v3635_v61 = vmax.f32 %v3246_v43, %v3248_v44 }
 0x16c   : > { %v1186_v32 = vpop.f32.mrf.mxu0  ;;  %v1474_v35 = vpop.f32.mrf.mxu1 }
 0x16d   : > { %v2268_v0 = vpack.c.bf16 %v1611_v23, %v1611_v23  ;;  %v1587_v45 = vadd.f32 %v3349_v63, %v1555_v24  ;;  %v1268_v13 = vmax.f32 %v3633_v8, %v1186_v32 }
 0x16e   : > { %v2510_v14 = vpop.f32.mrf.mxu0  ;;  %v2572_v55 = vpop.f32.mrf.mxu1 }
 0x16f   : > { %1738 = vst.msk [vmem:[%s3359_s21 + $0x14] sm:$0xf] %vm1732_vm4, %v2268_v0  ;;  %v1612_v28 = vmax.f32 %v1587_v45, 0.0  ;;  %v1556_v29 = vmax.f32 %v1268_v13, %v1474_v35  ;;  %v3636_v35 = vmax.f32 %v3252_v48, %v3254_v49 }
 0x170   : > { %v1191_v2 = vpop.f32.mrf.mxu0  ;;  %v1479_v3 = vpop.f32.mrf.mxu1 }
 0x171   : > { %v2269_v6 = vpack.c.bf16 %v1612_v28, %v1612_v28  ;;  %v1588_v50 = vadd.f32 %v3349_v63, %v1556_v29  ;;  %v1269_v20 = vmax.f32 %v3634_v30, %v1191_v2  ;;  %v3637_v29 = vmax.f32 %v3258_v53, %v3260_v54 }
 0x172   : > { %v2513_v9 = vpop.f32.mrf.mxu0  ;;  %v2575_v18 = vpop.f32.mrf.mxu1 }
 0x173   : > { %1739 = vst.msk [vmem:[%s3359_s21 + $0x18] sm:$0xf] %vm1732_vm4, %v2269_v6  ;;  %v1613_v33 = vmax.f32 %v1588_v50, 0.0  ;;  %v1557_v34 = vmax.f32 %v1269_v20, %v1479_v3  ;;  %v3638_v18 = vmax.f32 %v3264_v58, %v3266_v59 }
 0x174   : > { %v1194_v19 = vpop.f32.mrf.mxu0  ;;  %v1482_v10 = vpop.f32.mrf.mxu1 }
 0x175   : > { %v2270_v25 = vpack.c.bf16 %v1613_v33, %v1613_v33  ;;  %v1589_v60 = vadd.f32 %v3349_v63, %v1557_v34  ;;  %v1270_v62 = vmax.f32 %v3635_v61, %v1194_v19 }
 0x176   : > { %v2514_v15 = vpop.f32.mrf.mxu0  ;;  %v2576_v51 = vpop.f32.mrf.mxu1 }
 0x177   : > { %1740 = vst.msk [vmem:[%s3359_s21 + $0x1c] sm:$0xf] %vm1732_vm4, %v2270_v25  ;;  %v1614_v38 = vmax.f32 %v1589_v60, 0.0  ;;  %v1558_v39 = vmax.f32 %v1270_v62, %v1482_v10  ;;  %v3639_v62 = vmax.f32 %v3270_v5, %v3272_v7 }
 0x178   : > { %v1199_v40 = vpop.f32.mrf.mxu0  ;;  %v1487_v23 = vpop.f32.mrf.mxu1 }
 0x179   : > { %v2271_v24 = vpack.c.bf16 %v1614_v38, %v1614_v38  ;;  %v1590_v32 = vadd.f32 %v3349_v63, %v1558_v39  ;;  %v1271_v0 = vmax.f32 %v3636_v35, %v1199_v40 }
 0x17a   : > { %v2517_v45 = vpop.f32.mrf.mxu0  ;;  %v2579_v8 = vpop.f32.mrf.mxu1 }
 0x17b   : > { %1741 = vst.msk [vmem:[%s3359_s21 + $0x20] sm:$0xf] %vm1732_vm4, %v2271_v24  ;;  %v1615_v43 = vmax.f32 %v1590_v32, 0.0  ;;  %v1559_v44 = vmax.f32 %v1271_v0, %v1487_v23  ;;  %v3640_v32 = vmax.f32 %v3276_v16, %v3278_v17 }
 0x17c   : > { %v1202_v13 = vpop.f32.mrf.mxu0  ;;  %v1490_v14 = vpop.f32.mrf.mxu1 }
 0x17d   : > { %v2272_v55 = vpack.c.bf16 %v1615_v43, %v1615_v43  ;;  %v1591_v28 = vadd.f32 %v3349_v63, %v1559_v44  ;;  %v1272_v2 = vmax.f32 %v3637_v29, %v1202_v13 }
 0x17e   : > { %v2518_v3 = vpop.f32.mrf.mxu0  ;;  %v2580_v6 = vpop.f32.mrf.mxu1 }
 0x17f   : > { %1742 = vst.msk [vmem:[%s3359_s21 + $0x24] sm:$0xf] %vm1732_vm4, %v2272_v55  ;;  %v1616_v48 = vmax.f32 %v1591_v28, 0.0  ;;  %v1560_v49 = vmax.f32 %v1272_v2, %v1490_v14  ;;  %v3641_v14 = vmax.f32 %v3282_v27, %v3284_v31 }
 0x180   : > { %v1207_v50 = vpop.f32.mrf.mxu0  ;;  %v1495_v30 = vpop.f32.mrf.mxu1 }
 0x181   : > { %v2273_v20 = vpack.c.bf16 %v1616_v48, %v1616_v48  ;;  %v1592_v9 = vadd.f32 %v3349_v63, %v1560_v49  ;;  %v1273_v33 = vmax.f32 %v3638_v18, %v1207_v50  ;;  %v3642_v49 = vmax.f32 %v3288_v41, %v3290_v42 }
 0x182   : > { %v2521_v34 = vpop.f32.mrf.mxu0  ;;  %v2583_v19 = vpop.f32.mrf.mxu1 }
 0x183   : > { %1743 = vst.msk [vmem:[%s3359_s21 + $0x28] sm:$0xf] %vm1732_vm4, %v2273_v20  ;;  %v1617_v53 = vmax.f32 %v1592_v9, 0.0  ;;  %v1561_v54 = vmax.f32 %v1273_v33, %v1495_v30  ;;  %v3643_v19 = vmax.f32 %v3294_v52, %v3296_v56 }
 0x184   : > { %v1210_v10 = vpop.f32.mrf.mxu0  ;;  %v1498_v25 = vpop.f32.mrf.mxu1 }
 0x185   : > { %v2274_v60 = vpack.c.bf16 %v1617_v53, %v1617_v53  ;;  %v1593_v61 = vadd.f32 %v3349_v63, %v1561_v54  ;;  %v1274_v15 = vmax.f32 %v3639_v62, %v1210_v10 }
 0x186   : > { %v2522_v51 = vpop.f32.mrf.mxu0  ;;  %v2584_v38 = vpop.f32.mrf.mxu1 }
 0x187   : > { %1744 = vst.msk [vmem:[%s3359_s21 + $0x2c] sm:$0xf] %vm1732_vm4, %v2274_v60  ;;  %v1618_v58 = vmax.f32 %v1593_v61, 0.0  ;;  %v1562_v59 = vmax.f32 %v1274_v15, %v1498_v25  ;;  %v3644_v15 = vmax.f32 %v3300_v11, %v3302_v12 }
 0x188   : > { %v1215_v39 = vpop.f32.mrf.mxu0  ;;  %v1503_v40 = vpop.f32.mrf.mxu1 }
 0x189   : > { %v2275_v23 = vpack.c.bf16 %v1618_v58, %v1618_v58  ;;  %v1594_v24 = vadd.f32 %v3349_v63, %v1562_v59  ;;  %v1275_v35 = vmax.f32 %v3640_v32, %v1215_v39 }
 0x18a   : > { %v2525_v0 = vpop.f32.mrf.mxu0  ;;  %v2587_v45 = vpop.f32.mrf.mxu1 }
 0x18b   : > { %1745 = vst.msk [vmem:[%s3359_s21 + $0x30] sm:$0xf] %vm1732_vm4, %v2275_v23  ;;  %v1619_v5 = vmax.f32 %v1594_v24, 0.0  ;;  %v1563_v7 = vmax.f32 %v1275_v35, %v1503_v40  ;;  %v3645_v24 = vmax.f32 %v3306_v37, %v3308_v47 }
 0x18c   : > { %v1218_v8 = vpop.f32.mrf.mxu0  ;;  %v1506_v43 = vpop.f32.mrf.mxu1 }
 0x18d   : > { %v2276_v44 = vpack.c.bf16 %v1619_v5, %v1619_v5  ;;  %v1595_v13 = vadd.f32 %v3349_v63, %v1563_v7  ;;  %v1276_v55 = vmax.f32 %v3641_v14, %v1218_v8 }
 0x18e   : > { %v2526_v28 = vpop.f32.mrf.mxu0  ;;  %v2588_v29 = vpop.f32.mrf.mxu1 }
 0x18f   : > { %1746 = vst.msk [vmem:[%s3359_s21 + $0x34] sm:$0xf] %vm1732_vm4, %v2276_v44  ;;  %v1620_v16 = vmax.f32 %v1595_v13, 0.0  ;;  %v1564_v17 = vmax.f32 %v1276_v55, %v1506_v43  ;;  %v3646_v43 = vmax.f32 %v3312_v1, %v3314_v4 }
 0x190   : > { %v1223_v2 = vpop.f32.mrf.mxu0  ;;  %v1511_v3 = vpop.f32.mrf.mxu1 }
 0x191   : > { %v2277_v6 = vpack.c.bf16 %v1620_v16, %v1620_v16  ;;  %v1596_v48 = vadd.f32 %v3349_v63, %v1564_v17  ;;  %v1277_v50 = vmax.f32 %v3642_v49, %v1223_v2  ;;  %v3647_v17 = vmax.f32 %v3318_v26, %v3320_v36 }
 0x192   : > { %v2529_v30 = vpop.f32.mrf.mxu0  ;;  %v2591_v20 = vpop.f32.mrf.mxu1 }
 0x193   : > { %1747 = vst.msk [vmem:[%s3359_s21 + $0x38] sm:$0xf] %vm1732_vm4, %v2277_v6  ;;  %v1621_v27 = vmax.f32 %v1596_v48, 0.0  ;;  %v1565_v31 = vmax.f32 %v1277_v50, %v1511_v3  ;;  %v3648_v20 = vmax.f32 %v3324_v46, %v3326_v57 }
 0x194   : > { %v1226_v9 = vpop.f32.mrf.mxu0  ;;  %v1514_v18 = vpop.f32.mrf.mxu1 }
 0x195   : > { %v2278_v33 = vpack.c.bf16 %v1621_v27, %v1621_v27  ;;  %v1597_v34 = vadd.f32 %v3349_v63, %v1565_v31  ;;  %v1278_v53 = vmax.f32 %v3643_v19, %v1226_v9 }
 0x196   : > { %v2530_v54 = vpop.f32.mrf.mxu0  ;;  %v2592_v10 = vpop.f32.mrf.mxu1 }
 0x197   : > { %1748 = vst.msk [vmem:[%s3359_s21 + $0x3c] sm:$0xf] %vm1732_vm4, %v2278_v33  ;;  %v1622_v41 = vmax.f32 %v1597_v34, 0.0  ;;  %v1566_v42 = vmax.f32 %v1278_v53, %v1514_v18  ;;  %v3649_v53 = vmax.f32 %v3330_v21, %v3332_v22 }
 0x198   : > { %v1231_v25 = vpop.f32.mrf.mxu0  ;;  %v1519_v60 = vpop.f32.mrf.mxu1 }
 0x199   : > { %v2279_v61 = vpack.c.bf16 %v1622_v41, %v1622_v41  ;;  %v1598_v62 = vadd.f32 %v3349_v63, %v1566_v42  ;;  %v1279_v51 = vmax.f32 %v3644_v15, %v1231_v25  ;;  %v3651_v15 = vld [vmem:[#allocation4_spill] sm:$0xff] }
 0x19a   : > { %v2533_v38 = vpop.f32.mrf.mxu0  ;;  %v2595_v58 = vpop.f32.mrf.mxu1 }
 0x19b   : > { %1749 = vst.msk [vmem:[%s3359_s21 + $0x40] sm:$0xf] %vm1732_vm4, %v2279_v61  ;;  %v1623_v52 = vmax.f32 %v1598_v62, 0.0  ;;  %v1567_v56 = vmax.f32 %v1279_v51, %v1519_v60  ;;  %v3650_v62 = vld [vmem:[#allocation3_spill] sm:$0xff] }
 0x19c   : > { %v1234_v59 = vpop.f32.mrf.mxu0  ;;  %v1522_v39 = vpop.f32.mrf.mxu1  ;;  %v3652_v51 = vmax.f32 %v3650_v62, %v3651_v15 }
 0x19d   : > { %v2280_v40 = vpack.c.bf16 %v1623_v52, %v1623_v52  ;;  %v1599_v23 = vadd.f32 %v3349_v63, %v1567_v56  ;;  %v1280_v32 = vmax.f32 %v3645_v24, %v1234_v59 }
 0x19e   : > { %v2534_v35 = vpop.f32.mrf.mxu0  ;;  %v2596_v0 = vpop.f32.mrf.mxu1 }
 0x19f   : > { %1750 = vst.msk [vmem:[%s3359_s21 + $0x44] sm:$0xf] %vm1732_vm4, %v2280_v40  ;;  %v1624_v11 = vmax.f32 %v1599_v23, 0.0  ;;  %v1568_v12 = vmax.f32 %v1280_v32, %v1522_v39 }
 0x1a0   : > { %v1239_v45 = vpop.f32.mrf.mxu0  ;;  %v1527_v5 = vpop.f32.mrf.mxu1 }
 0x1a1   : > { %v2281_v7 = vpack.c.bf16 %v1624_v11, %v1624_v11  ;;  %v1600_v8 = vadd.f32 %v3349_v63, %v1568_v12  ;;  %v1281_v44 = vmax.f32 %v3646_v43, %v1239_v45 }
 0x1a2   : > { %v2537_v13 = vpop.f32.mrf.mxu0  ;;  %v2599_v14 = vpop.f32.mrf.mxu1 }
 0x1a3   : > { %1751 = vst.msk [vmem:[%s3359_s21 + $0x48] sm:$0xf] %vm1732_vm4, %v2281_v7  ;;  %v1625_v37 = vmax.f32 %v1600_v8, 0.0  ;;  %v1569_v47 = vmax.f32 %v1281_v44, %v1527_v5 }
 0x1a4   : > { %v1242_v55 = vpop.f32.mrf.mxu0  ;;  %v1530_v28 = vpop.f32.mrf.mxu1 }
 0x1a5   : > { %v2282_v29 = vpack.c.bf16 %v1625_v37, %v1625_v37  ;;  %v1601_v16 = vadd.f32 %v3349_v63, %v1569_v47  ;;  %v1282_v2 = vmax.f32 %v3647_v17, %v1242_v55 }
 0x1a6   : > { %v2538_v3 = vpop.f32.mrf.mxu0  ;;  %v2600_v6 = vpop.f32.mrf.mxu1 }
 0x1a7   : > { %1752 = vst.msk [vmem:[%s3359_s21 + $0x4c] sm:$0xf] %vm1732_vm4, %v2282_v29  ;;  %v1626_v1 = vmax.f32 %v1601_v16, 0.0  ;;  %v1570_v4 = vmax.f32 %v1282_v2, %v1530_v28 }
 0x1a8   : > { %v1247_v48 = vpop.f32.mrf.mxu0  ;;  %v1535_v49 = vpop.f32.mrf.mxu1 }
 0x1a9   : > { %v2283_v50 = vpack.c.bf16 %v1626_v1, %v1626_v1  ;;  %v1602_v30 = vadd.f32 %v3349_v63, %v1570_v4  ;;  %v1283_v27 = vmax.f32 %v3648_v20, %v1247_v48 }
 0x1aa   : > { %v2541_v31 = vpop.f32.mrf.mxu0  ;;  %v2603_v9 = vpop.f32.mrf.mxu1 }
 0x1ab   : > { %1753 = vst.msk [vmem:[%s3359_s21 + $0x50] sm:$0xf] %vm1732_vm4, %v2283_v50  ;;  %v1627_v26 = vmax.f32 %v1602_v30, 0.0  ;;  %v1571_v36 = vmax.f32 %v1283_v27, %v1535_v49 }
 0x1ac   : > { %v1250_v18 = vpop.f32.mrf.mxu0  ;;  %v1538_v33 = vpop.f32.mrf.mxu1 }
 0x1ad   : > { %v2284_v34 = vpack.c.bf16 %v1627_v26, %v1627_v26  ;;  %v1603_v19 = vadd.f32 %v3349_v63, %v1571_v36  ;;  %v1284_v54 = vmax.f32 %v3649_v53, %v1250_v18 }
 0x1ae   : > { %v2542_v10 = vpop.f32.mrf.mxu0  ;;  %v2604_v41 = vpop.f32.mrf.mxu1 }
 0x1af   : > { %1754 = vst.msk [vmem:[%s3359_s21 + $0x54] sm:$0xf] %vm1732_vm4, %v2284_v34  ;;  %v1628_v46 = vmax.f32 %v1603_v19, 0.0  ;;  %v1572_v57 = vmax.f32 %v1284_v54, %v1538_v33 }
 0x1b0   : > { %v1255_v42 = vpop.f32.mrf.mxu0  ;;  %v1543_v25 = vpop.f32.mrf.mxu1 }
 0x1b1   : > { %v2285_v60 = vpack.c.bf16 %v1628_v46, %v1628_v46  ;;  %v1604_v61 = vadd.f32 %v3349_v63, %v1572_v57  ;;  %v1285_v38 = vmax.f32 %v3652_v51, %v1255_v42 }
 0x1b2   : > { %v2545_v58 = vpop.f32.mrf.mxu0  ;;  %v2607_v21 = vpop.f32.mrf.mxu1 }
 0x1b3   : > { %1755 = vst.msk [vmem:[%s3359_s21 + $0x58] sm:$0xf] %vm1732_vm4, %v2285_v60  ;;  %v1629_v22 = vmax.f32 %v1604_v61, 0.0  ;;  %v1573_v52 = vmax.f32 %v1285_v38, %v1543_v25 }
 0x1b4   : > { %v1258_v56 = vpop.f32.mrf.mxu0  ;;  %v1546_v59 = vpop.f32.mrf.mxu1 }
 0x1b5   : > { %v2286_v39 = vpack.c.bf16 %v1629_v22, %v1629_v22  ;;  %v1605_v40 = vadd.f32 %v3349_v63, %v1573_v52 }
 0x1b6   : > { %v2546_v23 = vpop.f32.mrf.mxu0  ;;  %v2608_v24 = vpop.f32.mrf.mxu1 }
 0x1b7   : > { %1756 = vst.msk [vmem:[%s3359_s21 + $0x5c] sm:$0xf] %vm1732_vm4, %v2286_v39  ;;  %v1630_v32 = vmax.f32 %v1605_v40, 0.0  ;;  %1764 = sbr.rel (!%p2914_p4) target bundleno = 514 (0x202), region = 48 }
 0x1b9   : > { %v2287_v35 = vpack.c.bf16 %v1630_v32, %v1630_v32 }
 0x1bb   : > { %1757 = vst.msk [vmem:[%s3359_s21 + $0x60] sm:$0xf] %vm1732_vm4, %v2287_v35 }
 0x1bc   : > { %s3660_s18 = smov (!%p1767_p8, %s1766_s18), 25 }
 0x1bd   : > { %s2251_s27 = sshll.u32 %s3660_s18, 6 }
 0x1be   : > { %p2254_p9 = scmp.eq.s32.totalorder %s2251_s27, 0 }
 0x1bf   : > { %2759 = sdivrem.u32 (!%p2254_p9), %s3660_s18, 25 }
 0x1c0   : > { %1775 = sbr.rel (%p2254_p9) target bundleno = 514 (0x202), region = 52 }
 0x1c8   : > { %s3513_s29 = spop.drf %2759 }
 0x1c9   : > { %p2255_p10 = scmp.le.s32.totalorder %s3513_s29, 0 }
 0x1ca   : > { %s3653_s24 = smov (!%p2255_p10), %s3507_s26  ;;  %s3654_s8 = smov (!%p2255_p10), %s3359_s21 }
 0x1cb   : > { %2046 = sbr.rel (%p2255_p10) target bundleno = 489 (0x1e9), region = 133  ;;  %s3522_s30 = smov (!%p2255_p10), 0  }
 0x1cc   : > { %s3524_s7 = smov (!%p2255_p10), 0  }
 0x1d0 LB: >> { %v1793_v63 = vld [vmem:[%s2825_s8] sm:$0xf]  ;;  %v1795_v0 = vld [vmem:[%s2825_s8 + $0x4] sm:$0xf]  ;;  %v1797_v11 = vld [vmem:[%s2825_s8 + $0x8] sm:$0xf]  ;;  %s2833_s7 = sphi %s3524_s7, %s1787_s7   ;;  %s2829_s30 = sphi %s3522_s30, %s3655_s30   ;;  %s2825_s8 = sphi %s3654_s8, %s1848_s8   ;;  %s2821_s24 = sphi %s3653_s24, %s1849_s24  }
 0x1d1   : >> { %1794 = vst [vmem:[%s2821_s24] sm:$0xf] %v1793_v63  ;;  %1796 = vst [vmem:[%s2821_s24 + $0x4] sm:$0xf] %v1795_v0  ;;  %v1799_v12 = vld [vmem:[%s2825_s8 + $0xc] sm:$0xf]  ;;  %s1843_s9 = sadd.s32 1, %s2829_s30 }
 0x1d2   : >> { %1798 = vst [vmem:[%s2821_s24 + $0x8] sm:$0xf] %v1797_v11  ;;  %v1801_v45 = vld [vmem:[%s2825_s8 + $0x10] sm:$0xf]  ;;  %v1803_v5 = vld [vmem:[%s2825_s8 + $0x14] sm:$0xf]  ;;  %p1844_p11 = scmp.ge.s32.totalorder %s1843_s9, %s3513_s29 }
 0x1d3   : >> { %1800 = vst [vmem:[%s2821_s24 + $0xc] sm:$0xf] %v1799_v12  ;;  %1802 = vst [vmem:[%s2821_s24 + $0x10] sm:$0xf] %v1801_v45  ;;  %v1805_v7 = vld [vmem:[%s2825_s8 + $0x18] sm:$0xf] }
 0x1d4   : >> { %1804 = vst [vmem:[%s2821_s24 + $0x14] sm:$0xf] %v1803_v5  ;;  %v1807_v8 = vld [vmem:[%s2825_s8 + $0x1c] sm:$0xf]  ;;  %v1809_v43 = vld [vmem:[%s2825_s8 + $0x20] sm:$0xf] }
 0x1d5   : >> { %1806 = vst [vmem:[%s2821_s24 + $0x18] sm:$0xf] %v1805_v7  ;;  %1808 = vst [vmem:[%s2821_s24 + $0x1c] sm:$0xf] %v1807_v8  ;;  %v1811_v44 = vld [vmem:[%s2825_s8 + $0x24] sm:$0xf] }
 0x1d6   : >> { %1810 = vst [vmem:[%s2821_s24 + $0x20] sm:$0xf] %v1809_v43  ;;  %v1813_v13 = vld [vmem:[%s2825_s8 + $0x28] sm:$0xf]  ;;  %v1815_v14 = vld [vmem:[%s2825_s8 + $0x2c] sm:$0xf] }
 0x1d7   : >> { %1812 = vst [vmem:[%s2821_s24 + $0x24] sm:$0xf] %v1811_v44  ;;  %1814 = vst [vmem:[%s2821_s24 + $0x28] sm:$0xf] %v1813_v13  ;;  %v1817_v37 = vld [vmem:[%s2825_s8 + $0x30] sm:$0xf] }
 0x1d8   : >> { %1816 = vst [vmem:[%s2821_s24 + $0x2c] sm:$0xf] %v1815_v14  ;;  %v1819_v47 = vld [vmem:[%s2825_s8 + $0x34] sm:$0xf]  ;;  %v1821_v55 = vld [vmem:[%s2825_s8 + $0x38] sm:$0xf] }
 0x1d9   : >> { %1818 = vst [vmem:[%s2821_s24 + $0x30] sm:$0xf] %v1817_v37  ;;  %1820 = vst [vmem:[%s2821_s24 + $0x34] sm:$0xf] %v1819_v47  ;;  %v1823_v28 = vld [vmem:[%s2825_s8 + $0x3c] sm:$0xf] }
 0x1da   : >> { %1822 = vst [vmem:[%s2821_s24 + $0x38] sm:$0xf] %v1821_v55  ;;  %v1825_v29 = vld [vmem:[%s2825_s8 + $0x40] sm:$0xf]  ;;  %v1827_v16 = vld [vmem:[%s2825_s8 + $0x44] sm:$0xf] }
 0x1db   : >> { %1824 = vst [vmem:[%s2821_s24 + $0x3c] sm:$0xf] %v1823_v28  ;;  %1826 = vst [vmem:[%s2821_s24 + $0x40] sm:$0xf] %v1825_v29  ;;  %v1829_v17 = vld [vmem:[%s2825_s8 + $0x48] sm:$0xf] }
 0x1dc   : >> { %1828 = vst [vmem:[%s2821_s24 + $0x44] sm:$0xf] %v1827_v16  ;;  %v1831_v2 = vld [vmem:[%s2825_s8 + $0x4c] sm:$0xf]  ;;  %v1833_v3 = vld [vmem:[%s2825_s8 + $0x50] sm:$0xf] }
 0x1dd   : >> { %1830 = vst [vmem:[%s2821_s24 + $0x48] sm:$0xf] %v1829_v17  ;;  %1832 = vst [vmem:[%s2821_s24 + $0x4c] sm:$0xf] %v1831_v2  ;;  %v1835_v6 = vld [vmem:[%s2825_s8 + $0x54] sm:$0xf] }
 0x1de   : >> { %1834 = vst [vmem:[%s2821_s24 + $0x50] sm:$0xf] %v1833_v3  ;;  %v1837_v1 = vld [vmem:[%s2825_s8 + $0x58] sm:$0xf]  ;;  %v1839_v4 = vld [vmem:[%s2825_s8 + $0x5c] sm:$0xf] }
 0x1df   : >> { %1836 = vst [vmem:[%s2821_s24 + $0x54] sm:$0xf] %v1835_v6  ;;  %1838 = vst [vmem:[%s2821_s24 + $0x58] sm:$0xf] %v1837_v1  ;;  %v1841_v48 = vld [vmem:[%s2825_s8 + $0x60] sm:$0xf] }
 0x1e0   : >> { %1840 = vst [vmem:[%s2821_s24 + $0x5c] sm:$0xf] %v1839_v4  ;;  %1842 = vst [vmem:[%s2821_s24 + $0x60] sm:$0xf] %v1841_v48  ;;  %s3662_s9 = smov (%p1844_p11, %s1843_s9), 0  ;;  %s1787_s7 = sadd.s32 1, %s2833_s7  }
 0x1e1   : >> { %s1846_s10 = smul.u32 100, %s3662_s9  ;;  %p1786_p12 = scmp.ge.s32.totalorder %s1787_s7, %s3513_s29 }
 0x1e2   : >> { %s3655_s30 = smov %s3662_s9 }
 0x1e3   : >> { %s1848_s8 = scalar_lea.vmem %s3359_s21, %s1846_s10 [#allocation2]   ;;  %s1849_s24 = scalar_lea.vmem %s3507_s26, %s1846_s10  }
 0x1e4   : > { %1789 = sbr.rel (!%p1786_p12) target bundleno = 464 (0x1d0), region = 139 }
 0x1e9 PF: > { %2761 = sdivrem.u32 %s3660_s18, 25 }
 0x1ea   : > { %s2256_s11 = smul.u32 100, %s3513_s29 }
 0x1ec   : > { %s1854_s12 = scalar_lea.vmem %s3359_s21, %s2256_s11 [#allocation2]   ;;  %s1856_s13 = scalar_lea.vmem %s3507_s26, %s2256_s11  }
 0x1f2   : > { %s2762_s14 = spop.drf %2761 }
 0x1f3   : > { %p2258_p13 = scmp.le.s32.totalorder %s2762_s14, 0 }
 0x1f4   : > { %s2835_s15 = smov (!%p2258_p13), %s1856_s13   ;;  %s2839_s16 = smov (!%p2258_p13), %s1854_s12  }
 0x1f5   : > { %2060 = sbr.rel (%p2258_p13) target bundleno = 514 (0x202), region = 144  ;;  %s2843_s17 = smov (!%p2258_p13), 0  }
 0x1f6   : > { %s2847_s19 = smov (!%p2258_p13), 0  }
 0x1fa LB: >> { %v1866_v49 = vld [vmem:[%s2841_s16] sm:$0xf]  ;;  %s1868_s20 = sadd.s32 1, %s2845_s17  ;;  %s1860_s19 = sadd.s32 1, %s2849_s19   ;;  %s2849_s19 = sphi %s2847_s19, %s1860_s19   ;;  %s2845_s17 = sphi %s2843_s17, %s2844_s17   ;;  %s2841_s16 = sphi %s2839_s16, %s1873_s16   ;;  %s2837_s15 = sphi %s2835_s15, %s1874_s15  }
 0x1fb   : >> { %1867 = vst [vmem:[%s2837_s15] sm:$0xf] %v1866_v49  ;;  %p1869_p0 = scmp.ge.s32.totalorder %s1868_s20, %s2762_s14  ;;  %p1859_p1 = scmp.ge.s32.totalorder %s1860_s19, %s2762_s14 }
 0x1fd   : >> { %s3664_s20 = smov (%p1869_p0, %s1868_s20), 0  ;;  %1862 = sbr.rel (!%p1859_p1) target bundleno = 506 (0x1fa), region = 150 }
 0x1fe   : >> { %s2259_s21 = sshll.u32 %s3664_s20, 2  ;;  %s2844_s17 = smov %s3664_s20  }
 0x1ff   : >> { %s1873_s16 = scalar_lea.vmem %s1854_s12, %s2259_s21 [#allocation2]   ;;  %s1874_s15 = scalar_lea.vmem %s1856_s13, %s2259_s21  }
 0x202 PF: > { %p13_p2 = scmp.ge.s32.totalorder %s2904_s25, 4   ;;  %s3656_s21 = smov %s2813_s22 }
 0x203   : > { %s3657_s22 = smov %s2912_s28  ;;  %s3658_s23 = smov %s2904_s25 }
 0x204   :  { %15 = sbr.rel (!%p13_p2) target bundleno = 2 (0x2), region = 161 }

// kernel: net_forward.4
= control target key start
LH: loop header
LB: loop body
LE: loop exit
PB: predicated region body
PF: predicated region fallthrough
CT: control target
= control target key end

     0   :  { %v781_v0 = vmov 0   ;;  %vm140_vm0 = vcmask 179200   ;;  %vm153_vm1 = vcmask 1042432   ;;  %vm640_vm2 = vcmask 125952   ;;  %s1104_s4 = inlined_call_operand.vmem [shape: bf16[150,16], index: 4, kind: input, shape index: {}]   ;;  %s1105_s0 = inlined_call_operand.vmem [shape: bf16[50,150], index: 0, kind: input, shape index: {}]   ;;  %s1106_s1 = inlined_call_operand.vmem [shape: bf16[50,150], index: 1, kind: input, shape index: {}]   ;;  %s1107_s2 = inlined_call_operand.vmem [shape: bf16[50,150], index: 2, kind: input, shape index: {}]   ;;  %s1108_s3 = inlined_call_operand.vmem [shape: bf16[50,150], index: 3, kind: input, shape index: {}]   ;;  %s1109_s5 = inlined_call_operand.vmem [shape: f32[1,16], index: 5, kind: input, shape index: {}]   ;;  %s1110_s6 = inlined_call_operand.vmem [shape: bf16[50,16], index: 6, kind: output, shape index: {}]  }
   0x1   :  { %157 = vmatprep.subr.bf16.mxu0 %v781_v0  ;;  %273 = vmatprep.subr.bf16.mxu1 %v781_v0  ;;  %v822_v1 = vld [vmem:[%s1104_s4 + $0x38] sm:$0xff]   ;;  %v829_v2 = vld [vmem:[%s1104_s4 + $0x30] sm:$0xff]   ;;  %v838_v3 = vld [vmem:[%s1104_s4 + $0x28] sm:$0xff]   ;;  %vm647_vm3 = vcmask 122880  }
   0x2   :  { %158 = vmatpush1.bf16.msra.mxu0 %v822_v1  ;;  %274 = vmatpush1.bf16.msra.mxu1 %v822_v1  ;;  %v847_v4 = vld [vmem:[%s1104_s4 + $0x20] sm:$0xff]   ;;  %v863_v7 = vld [vmem:[%s1104_s4 + $0x18] sm:$0xff]   ;;  %v873_v8 = vld [vmem:[%s1104_s4 + $0x10] sm:$0xff]  }
   0x3   :  { %159 = vmatprep.subr.bf16.mxu0 %v781_v0  ;;  %275 = vmatprep.subr.bf16.mxu1 %v781_v0  ;;  %v739_v5 = vld [vmem:[%s1105_s0 + $0x4] ss:$8 sps:$4 sm:$0xff]   ;;  %v735_v11 = vld [vmem:[%s1104_s4 + $0x48] ss:$0 sps:$4 sm:$0x77]  }
   0x4   :  { %671 = vmatprep.mubr.msk.bf16.mxu0 %vm140_vm0, %v739_v5  ;;  %v742_v6 = vld [vmem:[%s1106_s1 + $0x4] ss:$8 sps:$4 sm:$0xff]   ;;  %v902_v12 = vsel %vm153_vm1, %v735_v11, 0  ;;  %v737_v14 = vld [vmem:[%s1105_s0] ss:$8 sps:$4 sm:$0xff]  }
   0x5   :  { %683 = vmatprep.mubr.msk.bf16.mxu1 %vm140_vm0, %v742_v6  ;;  %v882_v9 = vld [vmem:[%s1104_s4 + $0x8] sm:$0xff]   ;;  %v891_v10 = vld [vmem:[%s1104_s4] sm:$0xff]   ;;  %v743_v16 = vld [vmem:[%s1105_s0 + $0x14] ss:$8 sps:$4 sm:$0xff]  }
   0x6   :  { %160 = vmatpush1.bf16.msra.mxu0 %v829_v2  ;;  %276 = vmatpush1.bf16.msra.mxu1 %v829_v2  ;;  %v909_v13 = vld [vmem:[%s1104_s4 + $0x40] sm:$0xff]   ;;  %v746_v17 = vld [vmem:[%s1106_s1 + $0x14] ss:$8 sps:$4 sm:$0xff]   ;;  %v745_v18 = vld [vmem:[%s1105_s0 + $0x10] ss:$8 sps:$4 sm:$0xff]  }
   0x7   :  { %161 = vmatprep.subr.bf16.mxu0 %v781_v0  ;;  %277 = vmatprep.subr.bf16.mxu1 %v781_v0  ;;  %v740_v15 = vld [vmem:[%s1106_s1] ss:$8 sps:$4 sm:$0xff]   ;;  %v748_v19 = vld [vmem:[%s1106_s1 + $0x10] ss:$8 sps:$4 sm:$0xff]   ;;  %v749_v20 = vld [vmem:[%s1105_s0 + $0x24] ss:$8 sps:$4 sm:$0xff]  }
   0x8   :  { %v752_v21 = vld [vmem:[%s1106_s1 + $0x24] ss:$8 sps:$4 sm:$0xff]   ;;  %v751_v22 = vld [vmem:[%s1105_s0 + $0x20] ss:$8 sps:$4 sm:$0xff]   ;;  %v49_v24 = vld [vmem:[%s1105_s0 + $0x30] sm:$0x11] }
   0x9   :  { %v754_v23 = vld [vmem:[%s1106_s1 + $0x20] ss:$8 sps:$4 sm:$0xff]   ;;  %v227_v25 = vld [vmem:[%s1106_s1 + $0x30] sm:$0x11]  ;;  %v660_v26 = vcombine.high %v49_v24, %v49_v24  ;;  %v659_v28 = vcombine.low %v49_v24, %v49_v24  ;;  %v761_v30 = vld [vmem:[%s1107_s2 + $0x4] ss:$8 sps:$4 sm:$0xff]  }
   0xa   :  { %162 = vmatpush1.bf16.msra.mxu0 %v838_v3  ;;  %278 = vmatpush1.bf16.msra.mxu1 %v838_v3  ;;  %v682_v27 = vcombine.high %v227_v25, %v227_v25  ;;  %v681_v29 = vcombine.low %v227_v25, %v227_v25  ;;  %v764_v31 = vld [vmem:[%s1108_s3 + $0x4] ss:$8 sps:$4 sm:$0xff]   ;;  %v759_v32 = vld [vmem:[%s1107_s2] ss:$8 sps:$4 sm:$0xff]   ;;  %v765_v34 = vld [vmem:[%s1107_s2 + $0x14] ss:$8 sps:$4 sm:$0xff]  }
   0xb   :  { %163 = vmatprep.subr.bf16.mxu0 %v781_v0  ;;  %279 = vmatprep.subr.bf16.mxu1 %v781_v0  ;;  %v762_v33 = vld [vmem:[%s1108_s3] ss:$8 sps:$4 sm:$0xff]   ;;  %v767_v35 = vld [vmem:[%s1108_s3 + $0x14] ss:$8 sps:$4 sm:$0xff]   ;;  %v769_v36 = vld [vmem:[%s1107_s2 + $0x10] ss:$8 sps:$4 sm:$0xff]  }
   0xc   :  { %v770_v37 = vld [vmem:[%s1108_s3 + $0x10] ss:$8 sps:$4 sm:$0xff]   ;;  %v771_v38 = vld [vmem:[%s1107_s2 + $0x24] ss:$8 sps:$4 sm:$0xff]   ;;  %v775_v42 = vld [vmem:[%s1107_s2 + $0x20] ss:$8 sps:$4 sm:$0xff]  }
   0xd   :  { %v773_v39 = vld [vmem:[%s1108_s3 + $0x24] ss:$8 sps:$4 sm:$0xff]   ;;  %v350_v40 = vld [vmem:[%s1107_s2 + $0x30] sm:$0x11]  ;;  %v776_v43 = vld [vmem:[%s1108_s3 + $0x20] ss:$8 sps:$4 sm:$0xff]  }
   0xe   :  { %164 = vmatpush1.bf16.msra.mxu0 %v847_v4  ;;  %280 = vmatpush1.bf16.msra.mxu1 %v847_v4  ;;  %v473_v41 = vld [vmem:[%s1108_s3 + $0x30] sm:$0x11]  ;;  %v694_v44 = vcombine.high %v350_v40, %v350_v40  ;;  %v693_v46 = vcombine.low %v350_v40, %v350_v40 }
   0xf   :  { %165 = vmatprep.subr.bf16.mxu0 %v781_v0  ;;  %281 = vmatprep.subr.bf16.mxu1 %v781_v0  ;;  %v706_v45 = vcombine.high %v473_v41, %v473_v41  ;;  %v705_v47 = vcombine.low %v473_v41, %v473_v41 }
  0x12   :  { %166 = vmatpush1.bf16.msra.mxu0 %v863_v7  ;;  %282 = vmatpush1.bf16.msra.mxu1 %v863_v7 }
  0x13   :  { %167 = vmatprep.subr.bf16.mxu0 %v781_v0  ;;  %283 = vmatprep.subr.bf16.mxu1 %v781_v0 }
  0x16   :  { %168 = vmatpush1.bf16.msra.mxu0 %v873_v8  ;;  %284 = vmatpush1.bf16.msra.mxu1 %v873_v8 }
  0x17   :  { %169 = vmatprep.subr.bf16.mxu0 %v781_v0  ;;  %285 = vmatprep.subr.bf16.mxu1 %v781_v0 }
  0x1a   :  { %170 = vmatpush1.bf16.msra.mxu0 %v882_v9  ;;  %286 = vmatpush1.bf16.msra.mxu1 %v882_v9 }
  0x1b   :  { %171 = vmatprep.subr.bf16.mxu0 %v781_v0  ;;  %287 = vmatprep.subr.bf16.mxu1 %v781_v0 }
  0x1e   :  { %172 = vmatpush1.bf16.msra.mxu0 %v891_v10  ;;  %288 = vmatpush1.bf16.msra.mxu1 %v891_v10 }
  0x1f   :  { %185 = vmatprep.subr.bf16.mxu0 %v781_v0  ;;  %301 = vmatprep.subr.bf16.mxu1 %v781_v0 }
  0x22   :  { %186 = vmatpush2.bf16.msra.mxu0 %v902_v12  ;;  %302 = vmatpush2.bf16.msra.mxu1 %v902_v12 }
  0x23   :  { %187 = vmatprep.subr.bf16.mxu0 %v781_v0  ;;  %303 = vmatprep.subr.bf16.mxu1 %v781_v0 }
  0x26   :  { %188 = vmatpush2.bf16.msra.mxu0 %v909_v13  ;;  %304 = vmatpush2.bf16.msra.mxu1 %v909_v13 }
  0x27   :  { %396 = vmatprep.subr.bf16.mxu0 %v781_v0  ;;  %519 = vmatprep.subr.bf16.mxu1 %v781_v0 }
  0x29   :  { %190 = vmatmul.mubr.bf16.vlgmr.msra.gmra.mxu0 %v737_v14  ;;  %306 = vmatmul.mubr.bf16.vlgmr.msra.gmra.mxu1 %v740_v15 }
  0x2a   :  { %397 = vmatpush1.bf16.msra.mxu0 %v822_v1  ;;  %520 = vmatpush1.bf16.msra.mxu1 %v822_v1 }
  0x2b   :  { %398 = vmatprep.subr.bf16.mxu0 %v781_v0  ;;  %521 = vmatprep.subr.bf16.mxu1 %v781_v0 }
  0x2c   :  { %672 = vmatprep.mubr.msk.bf16.mxu0 %vm140_vm0, %v743_v16  ;;  %684 = vmatprep.mubr.msk.bf16.mxu1 %vm140_vm0, %v746_v17 }
  0x2e   :  { %399 = vmatpush1.bf16.msra.mxu0 %v829_v2  ;;  %522 = vmatpush1.bf16.msra.mxu1 %v829_v2 }
  0x2f   :  { %400 = vmatprep.subr.bf16.mxu0 %v781_v0  ;;  %523 = vmatprep.subr.bf16.mxu1 %v781_v0 }
  0x31   :  { %198 = vmatmul.mubr.bf16.gmra.mxu0 %v745_v18  ;;  %314 = vmatmul.mubr.bf16.gmra.mxu1 %v748_v19 }
  0x32   :  { %401 = vmatpush1.bf16.msra.mxu0 %v838_v3  ;;  %524 = vmatpush1.bf16.msra.mxu1 %v838_v3 }
  0x33   :  { %402 = vmatprep.subr.bf16.mxu0 %v781_v0  ;;  %525 = vmatprep.subr.bf16.mxu1 %v781_v0 }
  0x34   :  { %673 = vmatprep.mubr.msk.bf16.mxu0 %vm140_vm0, %v749_v20  ;;  %685 = vmatprep.mubr.msk.bf16.mxu1 %vm140_vm0, %v752_v21  ;;  %v1062_v20 = vld [vmem:[%s1109_s5] ss:$0 sm:$0xff] }
  0x36   :  { %403 = vmatpush1.bf16.msra.mxu0 %v847_v4  ;;  %526 = vmatpush1.bf16.msra.mxu1 %v847_v4 }
  0x37   :  { %404 = vmatprep.subr.bf16.mxu0 %v781_v0  ;;  %527 = vmatprep.subr.bf16.mxu1 %v781_v0 }
  0x39   :  { %206 = vmatmul.mubr.bf16.gmra.mxu0 %v751_v22  ;;  %322 = vmatmul.mubr.bf16.gmra.mxu1 %v754_v23 }
  0x3a   :  { %405 = vmatpush1.bf16.msra.mxu0 %v863_v7  ;;  %528 = vmatpush1.bf16.msra.mxu1 %v863_v7 }
  0x3b   :  { %406 = vmatprep.subr.bf16.mxu0 %v781_v0  ;;  %529 = vmatprep.subr.bf16.mxu1 %v781_v0 }
  0x3c   :  { %674 = vmatprep.mubr.msk.bf16.mxu0 %vm140_vm0, %v660_v26  ;;  %686 = vmatprep.mubr.msk.bf16.mxu1 %vm140_vm0, %v682_v27 }
  0x3e   :  { %407 = vmatpush1.bf16.msra.mxu0 %v873_v8  ;;  %530 = vmatpush1.bf16.msra.mxu1 %v873_v8 }
  0x3f   :  { %408 = vmatprep.subr.bf16.mxu0 %v781_v0  ;;  %531 = vmatprep.subr.bf16.mxu1 %v781_v0 }
  0x41   :  { %214 = vmatmul.mubr.bf16.gmra.mxu0 %v659_v28  ;;  %330 = vmatmul.mubr.bf16.gmra.mxu1 %v681_v29 }
  0x42   :  { %409 = vmatpush1.bf16.msra.mxu0 %v882_v9  ;;  %532 = vmatpush1.bf16.msra.mxu1 %v882_v9 }
  0x43   :  { %410 = vmatprep.subr.bf16.mxu0 %v781_v0  ;;  %533 = vmatprep.subr.bf16.mxu1 %v781_v0 }
  0x44   :  { %695 = vmatprep.mubr.msk.bf16.mxu0 %vm140_vm0, %v761_v30  ;;  %707 = vmatprep.mubr.msk.bf16.mxu1 %vm140_vm0, %v764_v31 }
  0x46   :  { %411 = vmatpush1.bf16.msra.mxu0 %v891_v10  ;;  %534 = vmatpush1.bf16.msra.mxu1 %v891_v10 }
  0x47   :  { %424 = vmatprep.subr.bf16.mxu0 %v781_v0  ;;  %547 = vmatprep.subr.bf16.mxu1 %v781_v0 }
  0x4a   :  { %425 = vmatpush2.bf16.msra.mxu0 %v902_v12  ;;  %548 = vmatpush2.bf16.msra.mxu1 %v902_v12 }
  0x4b   :  { %426 = vmatprep.subr.bf16.mxu0 %v781_v0  ;;  %549 = vmatprep.subr.bf16.mxu1 %v781_v0 }
  0x4e   :  { %427 = vmatpush2.bf16.msra.mxu0 %v909_v13  ;;  %550 = vmatpush2.bf16.msra.mxu1 %v909_v13 }
  0x51   :  { %429 = vmatmul.mubr.bf16.vlgmr.msra.gmra.mxu0 %v759_v32  ;;  %552 = vmatmul.mubr.bf16.vlgmr.msra.gmra.mxu1 %v762_v33 }
  0x52   :  { %696 = vmatprep.mubr.msk.bf16.mxu0 %vm140_vm0, %v765_v34  ;;  %708 = vmatprep.mubr.msk.bf16.mxu1 %vm140_vm0, %v767_v35 }
  0x59   :  { %437 = vmatmul.mubr.bf16.gmra.mxu0 %v769_v36  ;;  %560 = vmatmul.mubr.bf16.gmra.mxu1 %v770_v37 }
  0x5a   :  { %697 = vmatprep.mubr.msk.bf16.mxu0 %vm140_vm0, %v771_v38  ;;  %709 = vmatprep.mubr.msk.bf16.mxu1 %vm140_vm0, %v773_v39 }
  0x61   :  { %445 = vmatmul.mubr.bf16.gmra.mxu0 %v775_v42  ;;  %568 = vmatmul.mubr.bf16.gmra.mxu1 %v776_v43 }
  0x62   :  { %698 = vmatprep.mubr.msk.bf16.mxu0 %vm140_vm0, %v694_v44  ;;  %710 = vmatprep.mubr.msk.bf16.mxu1 %vm140_vm0, %v706_v45 }
  0x69   :  { %453 = vmatmul.mubr.bf16.gmra.mxu0 %v693_v46  ;;  %576 = vmatmul.mubr.bf16.gmra.mxu1 %v705_v47 }
  0xe9   :  { %v191_v48 = vpop.f32.mrf.mxu0  ;;  %v307_v49 = vpop.f32.mrf.mxu1 }
  0xea   :  { %v337_v16 = vmax.f32 %v191_v48, %v307_v49 }
  0xeb   :  { %v193_v50 = vpop.f32.mrf.mxu0  ;;  %v309_v51 = vpop.f32.mrf.mxu1 }
  0xed   :  { %v194_v52 = vpop.f32.mrf.mxu0  ;;  %v310_v53 = vpop.f32.mrf.mxu1 }
  0xee   :  { %v338_v23 = vmax.f32 %v194_v52, %v310_v53 }
  0xef   :  { %v196_v54 = vpop.f32.mrf.mxu0  ;;  %v312_v55 = vpop.f32.mrf.mxu1 }
  0xf1   :  { %v199_v56 = vpop.f32.mrf.mxu0  ;;  %v315_v57 = vpop.f32.mrf.mxu1 }
  0xf2   :  { %v339_v31 = vmax.f32 %v199_v56, %v315_v57 }
  0xf3   :  { %v201_v58 = vpop.f32.mrf.mxu0  ;;  %v317_v59 = vpop.f32.mrf.mxu1 }
  0xf5   :  { %v202_v60 = vpop.f32.mrf.mxu0  ;;  %v318_v61 = vpop.f32.mrf.mxu1 }
  0xf6   :  { %v340_v41 = vmax.f32 %v202_v60, %v318_v61 }
  0xf7   :  { %v204_v62 = vpop.f32.mrf.mxu0  ;;  %v320_v63 = vpop.f32.mrf.mxu1 }
  0xf9   :  { %v1047_v0 = vpop.f32.mrf.mxu0  ;;  %v1049_v1 = vpop.f32.mrf.mxu1 }
  0xfa   :  { %v341_v51 = vmax.f32 %v1047_v0, %v1049_v1 }
  0xfb   :  { %v209_v2 = vpop.f32.mrf.mxu0  ;;  %v325_v3 = vpop.f32.mrf.mxu1 }
  0xfd   :  { %v1051_v4 = vpop.f32.mrf.mxu0  ;;  %v1053_v5 = vpop.f32.mrf.mxu1 }
  0xfe   :  { %v342_v61 = vmax.f32 %v1051_v4, %v1053_v5 }
  0xff   :  { %v212_v6 = vpop.f32.mrf.mxu0  ;;  %v328_v7 = vpop.f32.mrf.mxu1 }
 0x101   :  { %v1055_v8 = vpop.f32.mrf.mxu0  ;;  %v1057_v9 = vpop.f32.mrf.mxu1 }
 0x103   :  { %v217_v10 = vpop.f32.mrf.mxu0  ;;  %v333_v11 = vpop.f32.mrf.mxu1 }
 0x104   :  { %v343_v11 = vmax.f32 %v1055_v8, %v1057_v9 }
 0x105   :  { %v218_v12 = vpop.f32.mrf.mxu0  ;;  %v334_v13 = vpop.f32.mrf.mxu1 }
 0x107   :  { %v219_v14 = vpop.f32.mrf.mxu0  ;;  %v335_v15 = vpop.f32.mrf.mxu1 }
 0x111   :  { %v430_v17 = vpop.f32.mrf.mxu0  ;;  %v553_v18 = vpop.f32.mrf.mxu1 }
 0x112   :  { %v460_v19 = vmax.f32 %v337_v16, %v430_v17 }
 0x113   :  { %v432_v21 = vpop.f32.mrf.mxu0  ;;  %v555_v22 = vpop.f32.mrf.mxu1 }
 0x114   :  { %v583_v24 = vmax.f32 %v460_v19, %v553_v18 }
 0x115   :  { %v433_v25 = vpop.f32.mrf.mxu0  ;;  %v556_v26 = vpop.f32.mrf.mxu1 }
 0x116   :  { %v597_v27 = vadd.f32 %v1062_v20, %v583_v24  ;;  %v461_v28 = vmax.f32 %v338_v23, %v433_v25 }
 0x117   :  { %v435_v29 = vpop.f32.mrf.mxu0  ;;  %v558_v30 = vpop.f32.mrf.mxu1 }
 0x118   :  { %v604_v32 = vmax.f32 %v597_v27, 0.0  ;;  %v584_v33 = vmax.f32 %v461_v28, %v556_v26 }
 0x119   :  { %v438_v34 = vpop.f32.mrf.mxu0  ;;  %v561_v35 = vpop.f32.mrf.mxu1 }
 0x11a   :  { %v719_v36 = vpack.c.bf16 %v604_v32, %v604_v32  ;;  %v598_v37 = vadd.f32 %v1062_v20, %v584_v33  ;;  %v462_v38 = vmax.f32 %v339_v31, %v438_v34 }
 0x11b   :  { %v440_v39 = vpop.f32.mrf.mxu0  ;;  %v563_v40 = vpop.f32.mrf.mxu1 }
 0x11c   :  { %641 = vst.msk [vmem:[%s1110_s6] sm:$0xf] %vm640_vm2, %v719_v36  ;;  %v605_v42 = vmax.f32 %v598_v37, 0.0  ;;  %v585_v43 = vmax.f32 %v462_v38, %v561_v35 }
 0x11d   :  { %v441_v44 = vpop.f32.mrf.mxu0  ;;  %v564_v45 = vpop.f32.mrf.mxu1 }
 0x11e   :  { %v720_v46 = vpack.c.bf16 %v605_v42, %v605_v42  ;;  %v599_v47 = vadd.f32 %v1062_v20, %v585_v43  ;;  %v463_v48 = vmax.f32 %v340_v41, %v441_v44 }
 0x11f   :  { %v443_v49 = vpop.f32.mrf.mxu0  ;;  %v566_v50 = vpop.f32.mrf.mxu1 }
 0x120   :  { %642 = vst.msk [vmem:[%s1110_s6 + $0x4] sm:$0xf] %vm640_vm2, %v720_v46  ;;  %v606_v52 = vmax.f32 %v599_v47, 0.0  ;;  %v586_v53 = vmax.f32 %v463_v48, %v564_v45 }
 0x121   :  { %v446_v54 = vpop.f32.mrf.mxu0  ;;  %v569_v55 = vpop.f32.mrf.mxu1 }
 0x122   :  { %v721_v56 = vpack.c.bf16 %v606_v52, %v606_v52  ;;  %v600_v57 = vadd.f32 %v1062_v20, %v586_v53  ;;  %v464_v58 = vmax.f32 %v341_v51, %v446_v54 }
 0x123   :  { %v448_v59 = vpop.f32.mrf.mxu0  ;;  %v571_v60 = vpop.f32.mrf.mxu1 }
 0x124   :  { %643 = vst.msk [vmem:[%s1110_s6 + $0x8] sm:$0xf] %vm640_vm2, %v721_v56  ;;  %v607_v62 = vmax.f32 %v600_v57, 0.0  ;;  %v587_v63 = vmax.f32 %v464_v58, %v569_v55 }
 0x125   :  { %v449_v0 = vpop.f32.mrf.mxu0  ;;  %v572_v1 = vpop.f32.mrf.mxu1 }
 0x126   :  { %v722_v2 = vpack.c.bf16 %v607_v62, %v607_v62  ;;  %v601_v3 = vadd.f32 %v1062_v20, %v587_v63  ;;  %v465_v6 = vmax.f32 %v342_v61, %v449_v0 }
 0x127   :  { %v451_v7 = vpop.f32.mrf.mxu0  ;;  %v574_v10 = vpop.f32.mrf.mxu1 }
 0x128   :  { %644 = vst.msk [vmem:[%s1110_s6 + $0xc] sm:$0xf] %vm640_vm2, %v722_v2  ;;  %v608_v4 = vmax.f32 %v601_v3, 0.0  ;;  %v588_v5 = vmax.f32 %v465_v6, %v572_v1 }
 0x129   :  { %v454_v12 = vpop.f32.mrf.mxu0  ;;  %v577_v13 = vpop.f32.mrf.mxu1 }
 0x12a   :  { %v723_v14 = vpack.c.bf16 %v608_v4, %v608_v4  ;;  %v602_v15 = vadd.f32 %v1062_v20, %v588_v5  ;;  %v466_v16 = vmax.f32 %v343_v11, %v454_v12 }
 0x12b   :  { %v456_v17 = vpop.f32.mrf.mxu0  ;;  %v579_v18 = vpop.f32.mrf.mxu1 }
 0x12c   :  { %645 = vst.msk [vmem:[%s1110_s6 + $0x10] sm:$0xf] %vm640_vm2, %v723_v14  ;;  %v609_v8 = vmax.f32 %v602_v15, 0.0  ;;  %v589_v9 = vmax.f32 %v466_v16, %v577_v13 }
 0x12d   :  { %v457_v19 = vpop.f32.mrf.mxu0  ;;  %v580_v21 = vpop.f32.mrf.mxu1 }
 0x12e   :  { %v724_v22 = vpack.c.bf16 %v609_v8, %v609_v8  ;;  %v603_v23 = vadd.f32 %v1062_v20, %v589_v9 }
 0x12f   :  { %v458_v24 = vpop.f32.mrf.mxu0  ;;  %v581_v25 = vpop.f32.mrf.mxu1 }
 0x130   :  { %646 = vst.msk [vmem:[%s1110_s6 + $0x14] sm:$0xf] %vm640_vm2, %v724_v22  ;;  %v610_v26 = vmax.f32 %v603_v23, 0.0 }
 0x132   :  { %v725_v27 = vpack.c.bf16 %v610_v26, %v610_v26 }
 0x134   :  { %648 = vst.msk [vmem:[%s1110_s6 + $0x18] sm:$0x1] %vm647_vm3, %v725_v27 }

// kernel: net_forward.5
= control target key start
LH: loop header
LB: loop body
LE: loop exit
PB: predicated region body
PF: predicated region fallthrough
CT: control target
= control target key end

     0   :  { %v768_v1 = vmov 0   ;;  %v98_v20 = vlaneseq  ;;  %v769_v25 = vmov 1966171168   ;;  %vm421_vm0 = vcmask 1043456   ;;  %s970_s0 = inlined_call_operand.vmem [shape: bf16[2,400], index: 0, kind: input, shape index: {}]   ;;  %s971_s1 = inlined_call_operand.vmem [shape: bf16[400,120], index: 1, kind: input, shape index: {}]   ;;  %s972_s2 = inlined_call_operand.vmem [shape: f32[1,120], index: 2, kind: input, shape index: {}]   ;;  %s973_s3 = inlined_call_operand.vmem [shape: bf16[120,84], index: 3, kind: input, shape index: {}]   ;;  %s974_s4 = inlined_call_operand.vmem [shape: f32[1,84], index: 4, kind: input, shape index: {}]   ;;  %s975_s5 = inlined_call_operand.vmem [shape: bf16[84,10], index: 5, kind: input, shape index: {}]   ;;  %s976_s6 = inlined_call_operand.vmem [shape: f32[1,10], index: 6, kind: input, shape index: {}]   ;;  %s977_s7 = inlined_call_operand.hbm [shape: f32[2,10], index: 7, kind: output, shape index: {}]  }
   0x1   :  { %v707_v0 = vld [vmem:[%s971_s1 + $0x78] sm:$0xff]   ;;  %308 = vmatprep.subr.bf16.mxu1 %v768_v1  ;;  %v710_v4 = vld [vmem:[%s971_s1 + $0x70] sm:$0xff]   ;;  %v713_v7 = vld [vmem:[%s971_s1 + $0x68] sm:$0xff]   ;;  %v96_v26 = vunpack.c.l.s4 %v769_v25  ;;  %vm264_vm1 = vcmask 130048   ;;  %v770_v39 = vmov 0.0  }
   0x2   :  { %v708_v2 = vld [vmem:[%s971_s1 + $0xb8] sm:$0xff]   ;;  %628 = vmatprep.subr.bf16.mxu0 %v707_v0  ;;  %v711_v5 = vld [vmem:[%s971_s1 + $0xb0] sm:$0xff]   ;;  %v714_v8 = vld [vmem:[%s971_s1 + $0xa8] sm:$0xff]   ;;  %v99_v27 = vshrl.u32 %v98_v20, 7 }
   0x3   :  { %v709_v3 = vld [vmem:[%s971_s1 + $0x38] sm:$0xff]   ;;  %309 = vmatpush1.bf16.msra.mxu1 %v708_v2  ;;  %v712_v6 = vld [vmem:[%s971_s1 + $0x30] sm:$0xff]   ;;  %v715_v9 = vld [vmem:[%s971_s1 + $0x28] sm:$0xff]   ;;  %v97_v31 = vunpack.c.0.s8 %v96_v26 }
   0x4   :  { %629 = vmatpush3.bf16.msra.mxu0 %v709_v3  ;;  %310 = vmatprep.subr.bf16.mxu1 %v768_v1  ;;  %v716_v10 = vld [vmem:[%s971_s1 + $0x60] sm:$0xff]   ;;  %v719_v13 = vld [vmem:[%s971_s1 + $0x58] sm:$0xff]   ;;  %v722_v16 = vld [vmem:[%s971_s1 + $0x50] sm:$0xff]  }
   0x5   :  { %630 = vmatprep.subr.bf16.mxu0 %v710_v4  ;;  %v717_v11 = vld [vmem:[%s971_s1 + $0xa0] sm:$0xff]   ;;  %v720_v14 = vld [vmem:[%s971_s1 + $0x98] sm:$0xff]   ;;  %v723_v17 = vld [vmem:[%s971_s1 + $0x90] sm:$0xff]   ;;  %v100_v33 = vsub.s32 %v97_v31, %v99_v27 }
   0x6   :  { %v718_v12 = vld [vmem:[%s971_s1 + $0x20] sm:$0xff]   ;;  %v721_v15 = vld [vmem:[%s971_s1 + $0x18] sm:$0xff]   ;;  %v724_v18 = vld [vmem:[%s971_s1 + $0x10] sm:$0xff]  }
   0x7   :  { %311 = vmatpush1.bf16.msra.mxu1 %v711_v5  ;;  %v725_v19 = vld [vmem:[%s971_s1 + $0x48] sm:$0xff]   ;;  %v583_v23 = vld.sshfl [vmem:[%s970_s0] sm:$0x33 pattern:$0x75316420]  ;;  %v733_v41 = vld [vmem:[%s973_s3 + $0x30] sm:$0xff]  }
   0x8   :  { %631 = vmatpush3.bf16.msra.mxu0 %v712_v6  ;;  %312 = vmatprep.subr.bf16.mxu1 %v768_v1  ;;  %v726_v21 = vld [vmem:[%s971_s1 + $0x88] sm:$0xff]   ;;  %v728_v24 = vld [vmem:[%s971_s1 + $0x40] sm:$0xff]   ;;  %v732_v28 = vld [vmem:[%s973_s3 + $0x38] ss:$0 sps:$4 sm:$0xff]   ;;  %v94_v30 = vcombine.high %v583_v23, %v583_v23  ;;  %v101_v37 = vrot.slane %v583_v23, %v100_v33 }
   0x9   :  { %632 = vmatprep.subr.bf16.mxu0 %v713_v7  ;;  %v727_v22 = vld [vmem:[%s971_s1 + $0x8] sm:$0xff]   ;;  %v729_v29 = vld [vmem:[%s971_s1 + $0x80] sm:$0xff]   ;;  %v423_v35 = vsel %vm421_vm0, %v732_v28, 0 }
   0xa   :  { %v730_v32 = vld [vmem:[%s971_s1] sm:$0xff]   ;;  %v108_v36 = vrot.slane %v94_v30, %v100_v33  ;;  %v109_v40 = vcombine.high %v101_v37, %v101_v37 }
   0xb   :  { %313 = vmatpush1.bf16.msra.mxu1 %v714_v8  ;;  %v731_v34 = vld [vmem:[%s971_s1 + $0xc0] sm:$0xff]  }
   0xc   :  { %633 = vmatpush3.bf16.msra.mxu0 %v715_v9  ;;  %314 = vmatprep.subr.bf16.mxu1 %v768_v1  ;;  %v110_v38 = vcombine.high %v108_v36, %v108_v36 }
   0xd   :  { %634 = vmatprep.subr.bf16.mxu0 %v716_v10  ;;  %300 = vmatprep.mubr.bf16.mxu0 %v108_v36 }
   0xe   :  { %609 = vmatprep.mubr.msk.bf16.mxu1 %vm264_vm1, %v110_v38 }
   0xf   :  { %315 = vmatpush1.bf16.msra.mxu1 %v717_v11 }
  0x10   :  { %635 = vmatpush3.bf16.msra.mxu0 %v718_v12  ;;  %316 = vmatprep.subr.bf16.mxu1 %v768_v1 }
  0x11   :  { %636 = vmatprep.subr.bf16.mxu0 %v719_v13 }
  0x13   :  { %317 = vmatpush1.bf16.msra.mxu1 %v720_v14 }
  0x14   :  { %637 = vmatpush3.bf16.msra.mxu0 %v721_v15  ;;  %318 = vmatprep.subr.bf16.mxu1 %v768_v1 }
  0x15   :  { %638 = vmatprep.subr.bf16.mxu0 %v722_v16 }
  0x17   :  { %319 = vmatpush1.bf16.msra.mxu1 %v723_v17 }
  0x18   :  { %639 = vmatpush3.bf16.msra.mxu0 %v724_v18  ;;  %320 = vmatprep.subr.bf16.mxu1 %v768_v1 }
  0x19   :  { %640 = vmatprep.subr.bf16.mxu0 %v725_v19 }
  0x1b   :  { %321 = vmatpush1.bf16.msra.mxu1 %v726_v21 }
  0x1c   :  { %641 = vmatpush3.bf16.msra.mxu0 %v727_v22  ;;  %322 = vmatprep.subr.bf16.mxu1 %v768_v1 }
  0x1d   :  { %642 = vmatprep.subr.bf16.mxu0 %v728_v24 }
  0x1f   :  { %323 = vmatpush1.bf16.msra.mxu1 %v729_v29 }
  0x20   :  { %643 = vmatpush3.bf16.msra.mxu0 %v730_v32  ;;  %338 = vmatprep.subr.bf16.mxu1 %v768_v1 }
  0x21   :  { %666 = vmatprep.subr.bf16.mxu0 %v770_v39 }
  0x23   :  { %301 = vmatmul.mubr.bf16.vlgmr.msra.gmra.mxu0 %v101_v37  ;;  %339 = vmatpush2.bf16.msra.mxu1 %v731_v34 }
  0x24   :  { %667 = vmatpush3.bf16.msra.mxu0 %v423_v35 }
  0x25   :  { %12 = vsyncpa [#allocation3], 0  ;;  %668 = vmatprep.subr.bf16.mxu0 %v770_v39  ;;  %686 = vmatprep.subr.bf16.mxu1 %v770_v39  ;;  %v734_v42 = vld [vmem:[%s973_s3 + $0x28] sm:$0xff]   ;;  %v735_v43 = vld [vmem:[%s973_s3 + $0x20] sm:$0xff]   ;;  %vm771_vm2 = vmmov 0   ;;  %vm522_vm3 = vcmask 1041408  }
  0x26   :  { %341 = vmatmul.mubr.bf16.vlgmr.msra.gmra.mxu1 %v109_v40  ;;  %v736_v44 = vld [vmem:[%s973_s3 + $0x18] sm:$0xff]   ;;  %v737_v45 = vld [vmem:[%s973_s3 + $0x10] sm:$0xff]   ;;  %v738_v46 = vld [vmem:[%s973_s3 + $0x8] sm:$0xff]   ;;  %682 = vmatprep.mubr.msk.bf16.mxu0 %vm771_vm2, %v770_v39  ;;  %vm417_vm4 = vcmask 982016   ;;  %vm518_vm5 = vcmask 687104   ;;  %s772_s12 = smov [#allocation2]  }
  0x27   :  { %v739_v47 = vld [vmem:[%s973_s3] sm:$0xff]   ;;  %698 = vmatprep.mubr.msk.bf16.mxu1 %vm771_vm2, %v770_v39  ;;  %v740_v48 = vld [vmem:[%s975_s5 + $0x28] ss:$0 sps:$4 sm:$0x33]   ;;  %v742_v51 = vld [vmem:[%s975_s5 + $0x18] sm:$0xff]   ;;  %vm566_vm6 = vcmask 74752  }
  0x28   :  { %669 = vmatpush3.bf16.msra.mxu0 %v733_v41  ;;  %v524_v49 = vsel %vm522_vm3, %v740_v48, 0  ;;  %v741_v50 = vld [vmem:[%s975_s5 + $0x20] sm:$0xff]   ;;  %v743_v52 = vld [vmem:[%s975_s5 + $0x10] sm:$0xff]   ;;  %v744_v3 = vld [vmem:[%s975_s5 + $0x8] sm:$0xff]  }
  0x29   :  { %670 = vmatprep.subr.bf16.mxu0 %v770_v39  ;;  %687 = vmatpush3.bf16.msra.mxu1 %v524_v49  ;;  %v582_v55 = vld [vmem:[%s972_s2] ss:$0 sm:$0xff] }
  0x2a   :  { %688 = vmatprep.subr.bf16.mxu1 %v770_v39  ;;  %v745_v4 = vld [vmem:[%s975_s5] sm:$0xff]   ;;  %s574_s5 = sshll.u32 %s772_s12, 4  ;;  %s575_s5 = int_to_ptr.vmem [resolvable:$true] %s574_s5 }
  0x2b   :  { %v610_v5 = vld [vmem:[%s974_s4] ss:$0 sm:$0xff]  ;;  %s746_s4 = scalar_lea.vmem %s575_s5, 32  ;;  %p751_p1 = scmp.lt.s32.totalorder %s575_s5, %s575_s5 }
  0x2c   :  { %671 = vmatpush3.bf16.msra.mxu0 %v734_v42  ;;  %v620_v13 = vld [vmem:[%s976_s6] ss:$0 sm:$0xff]  ;;  %p747_p0 = scmp.ne.s32.totalorder %s575_s5, %s746_s4  ;;  %p752_p2 = scmp.lt.s32.totalorder %s746_s4, %s746_s4 }
  0x2d   :  { %672 = vmatprep.subr.bf16.mxu0 %v770_v39  ;;  %689 = vmatpush3.bf16.msra.mxu1 %v741_v50 }
  0x2e   :  { %690 = vmatprep.subr.bf16.mxu1 %v770_v39  ;;  %p753_p3 = por %p752_p2, %p751_p1 }
  0x30   :  { %673 = vmatpush3.bf16.msra.mxu0 %v735_v43  ;;  %p754_p4 = pnand %p753_p3, %p747_p0 }
  0x31   :  { %674 = vmatprep.subr.bf16.mxu0 %v770_v39  ;;  %691 = vmatpush3.bf16.msra.mxu1 %v742_v51 }
  0x32   :  { %692 = vmatprep.subr.bf16.mxu1 %v770_v39 }
  0x34   :  { %675 = vmatpush3.bf16.msra.mxu0 %v736_v44 }
  0x35   :  { %676 = vmatprep.subr.bf16.mxu0 %v770_v39  ;;  %693 = vmatpush3.bf16.msra.mxu1 %v743_v52 }
  0x36   :  { %694 = vmatprep.subr.bf16.mxu1 %v770_v39 }
  0x38   :  { %677 = vmatpush3.bf16.msra.mxu0 %v737_v45 }
  0x39   :  { %678 = vmatprep.subr.bf16.mxu0 %v770_v39  ;;  %695 = vmatpush3.bf16.msra.mxu1 %v744_v3 }
  0x3a   :  { %696 = vmatprep.subr.bf16.mxu1 %v770_v39 }
  0x3c   :  { %679 = vmatpush3.bf16.msra.mxu0 %v738_v46 }
  0x3d   :  { %680 = vmatprep.subr.bf16.mxu0 %v770_v39  ;;  %697 = vmatpush3.bf16.msra.mxu1 %v745_v4 }
  0x40   :  { %681 = vmatpush3.bf16.msra.mxu0 %v739_v47 }
  0xe3   :  { %v644_v53 = vpop.f32.mrf.mxu0 }
  0xe5   :  { %v645_v54 = vpop.f32.mrf.mxu0 }
  0xe6   :  { %v646_v56 = vadd.f32 %v645_v54, %v644_v53  ;;  %v342_v57 = vpop.f32.mrf.mxu1 }
  0xe7   :  { %v647_v58 = vpop.f32.mrf.mxu0 }
  0xe8   :  { %v303_v59 = vadd.f32 %v646_v56, %v582_v55  ;;  %v344_v60 = vpop.f32.mrf.mxu1 }
  0xe9   :  { %v648_v61 = vpop.f32.mrf.mxu0 }
  0xea   :  { %v343_v62 = vadd.f32 %v342_v57, %v303_v59  ;;  %v345_v63 = vpop.f32.mrf.mxu1 }
  0xec   :  { %v348_v0 = vmax.f32 %v343_v62, 0.0  ;;  %v346_v1 = vpop.f32.mrf.mxu1 }
  0xee   :  { %v349_v2 = vpack.c.bf16 %v348_v0, %v348_v0 }
  0xf0   :  { %683 = vmatmul.mubr.msk.bf16.vlgmr.msra.gmra.mxu0 %vm417_vm4, %v349_v2 }
 0x1b0   :  { %v459_v6 = vpop.f32.mrf.mxu0 }
 0x1b1   :  { %v460_v7 = vadd.f32 %v610_v5, %v459_v6 }
 0x1b2   :  { %v684_v8 = vpop.f32.mrf.mxu0 }
 0x1b3   :  { %v465_v9 = vmax.f32 %v460_v7, 0.0 }
 0x1b4   :  { %v462_v10 = vpop.f32.mrf.mxu0 }
 0x1b5   :  { %v466_v11 = vpack.c.bf16 %v465_v9, %v465_v9 }
 0x1b6   :  { %v685_v12 = vpop.f32.mrf.mxu0 }
 0x1b7   :  { %699 = vmatmul.mubr.msk.bf16.vlgmr.msra.gmra.mxu1 %vm518_vm5, %v466_v11 }
 0x277   :  { %v560_v14 = vpop.f32.mrf.mxu1 }
 0x278   :  { %v561_v15 = vadd.f32 %v620_v13, %v560_v14 }
 0x279   :  { %v700_v16 = vpop.f32.mrf.mxu1 }
 0x27a   :  { %567 = vst.msk [vmem:[#allocation2] sm:$0x3] %vm566_vm6, %v561_v15 }
 0x27b   :  { %v563_v17 = vpop.f32.mrf.mxu1 }
 0x27c   :  { %757 = shalt.err (!%p754_p4)
}
 0x27d   :  { %577 = dma.vmem_to_hbm [thread:$0]  %s575_s5, 32, %s977_s7, [#allocation3]   ;;  %v701_v18 = vpop.f32.mrf.mxu1 }
 0x27e   :  { %766 = dma.done.wait [#allocation3], 32  }
 0x27f   :  { %767 = vsyncadd [#allocation3], 4294967264 }
 0x280   :  { %581 = vsyncpa [#allocation3], 1 }

</bundles_post_ra>
